<compile_context>
chip_gen: v6e
topology: v6e:2x2x1
jax: 0.10.0
libtpu: 0.0.40
codegen_flags: <defaults>
</compile_context>

<pallas_src>
import functools

import numpy as np

import jax
import jax.numpy as jnp
from jax import lax
from jax.experimental import pallas as pl
from jax.experimental.pallas import tpu as pltpu


_VMEM_SPEC = pl.BlockSpec(memory_space=pltpu.MemorySpace.VMEM)


# ----------------------------------------------------------------------------
# The fused kernel
# ----------------------------------------------------------------------------
def _lenet_fused_kernel(x_ref, w1b_ref, b1_ref, s1_ref, t1_ref,
                        w2b_ref, b2_ref, s2_ref, t2_ref,
                        wf1_ref, bf1_ref, wf2_ref, bf2_ref,
                        wf3_ref, bf3_ref, o_ref, *, batch):
    f32, bf16 = jnp.float32, jnp.bfloat16
    r1 = batch * 32 - 4      # conv1 output rows (row = b*32 + oy, oy < 28 valid)
    r2 = batch * 16 - 6      # conv2 output rows (row = b*16 + oy, oy < 10 valid)

    # ---- conv1 (5x5, 3->6) + bias + ReLU: 5 row-banded MXU matmuls ----------
    acc1 = jnp.dot(x_ref[0:r1, :], w1b_ref[0], preferred_element_type=f32)
    for ky in range(1, 5):
        acc1 = acc1 + jnp.dot(x_ref[ky:ky + r1, :], w1b_ref[ky],
                              preferred_element_type=f32)
    a1 = jnp.maximum(acc1 + b1_ref[...], 0.0).astype(bf16)          # (r1, 168)

    # ---- maxpool1 2x2: 0/1 selection matmuls + elementwise max --------------
    rmax = jnp.maximum(
        jnp.dot(s1_ref[0], a1, preferred_element_type=f32),
        jnp.dot(s1_ref[1], a1, preferred_element_type=f32)).astype(bf16)    # (16B,168)
    p1 = jnp.maximum(
        jnp.dot(rmax, t1_ref[0], preferred_element_type=f32),
        jnp.dot(rmax, t1_ref[1], preferred_element_type=f32)).astype(bf16)  # (16B, 84)

    # ---- conv2 (5x5, 6->15) + bias + ReLU ------------------------------------
    acc2 = jnp.dot(p1[0:r2, :], w2b_ref[0], preferred_element_type=f32)
    for ky in range(1, 5):
        acc2 = acc2 + jnp.dot(p1[ky:ky + r2, :], w2b_ref[ky],
                              preferred_element_type=f32)
    a2 = jnp.maximum(acc2 + b2_ref[...], 0.0).astype(bf16)          # (r2, 150)

    # ---- maxpool2 2x2 --------------------------------------------------------
    rmax2 = jnp.maximum(
        jnp.dot(s2_ref[0], a2, preferred_element_type=f32),
        jnp.dot(s2_ref[1], a2, preferred_element_type=f32)).astype(bf16)    # (5B, 150)
    p2 = jnp.maximum(
        jnp.dot(rmax2, t2_ref[0], preferred_element_type=f32),
        jnp.dot(rmax2, t2_ref[1], preferred_element_type=f32)).astype(bf16)  # (5B, 75)

    # ---- fc1 + ReLU: p2 rows are (y-major, batch-minor), so each conv-row y
    #      is a contiguous B-row slice matched against its own weight slab ----
    h = jnp.dot(p2[0:batch, :], wf1_ref[0], preferred_element_type=f32)
    for y in range(1, 5):
        h = h + jnp.dot(p2[y * batch:(y + 1) * batch, :], wf1_ref[y],
                        preferred_element_type=f32)
    h = jnp.maximum(h + bf1_ref[...], 0.0).astype(bf16)             # (B, 120)

    # ---- fc2 + ReLU ----------------------------------------------------------
    h = jnp.maximum(jnp.dot(h, wf2_ref[...], preferred_element_type=f32)
                    + bf2_ref[...], 0.0).astype(bf16)               # (B, 84)

    # ---- fc3: lane-dense (B, 128) padded output, sliced to 10 in the wrapper -
    o_ref[...] = (jnp.dot(h, wf3_ref[...], preferred_element_type=f32)
                  + bf3_ref[...])


# ----------------------------------------------------------------------------
# One-time host-side weight preprocessing
# ----------------------------------------------------------------------------
def prepare_params(p, batch):
    """Builds banded conv weights, pooling selection matrices and permuted fc
    weights for the fused kernel.  Pure numpy, done once at setup."""
    w1 = np.asarray(p["conv1_w"], np.float32)   # (6, 3, 5, 5)
    b1 = np.asarray(p["conv1_b"], np.float32)
    w2 = np.asarray(p["conv2_w"], np.float32)   # (15, 6, 5, 5)
    b2 = np.asarray(p["conv2_b"], np.float32)
    f1 = np.asarray(p["fc1_w"], np.float32)     # (120, 375)
    g1 = np.asarray(p["fc1_b"], np.float32)
    f2 = np.asarray(p["fc2_w"], np.float32)     # (84, 120)
    g2 = np.asarray(p["fc2_b"], np.float32)
    f3 = np.asarray(p["fc3_w"], np.float32)     # (10, 84)
    g3 = np.asarray(p["fc3_b"], np.float32)
    B = batch

    # conv1 banded weights: input cols (x*3+c), output cols (ox*6+n), one per ky.
    w1b = np.zeros((5, 32 * 3, 28 * 6), np.float32)
    for ky in range(5):
        for kx in range(5):
            for ox in range(28):
                x = ox + kx
                w1b[ky, x * 3:(x + 1) * 3, ox * 6:(ox + 1) * 6] = w1[:, :, ky, kx].T
    b1row = np.tile(b1, 28)[None, :]                                  # (1, 168)

    # pool1: row-pair selection (out row b*16+py <- src row b*32+2py(+1), py<14)
    s1 = np.zeros((2, B * 16, B * 32 - 4), np.float32)
    for b in range(B):
        for py in range(14):
            s1[0, b * 16 + py, b * 32 + 2 * py] = 1.0
            s1[1, b * 16 + py, b * 32 + 2 * py + 1] = 1.0
    # pool1: column-pair selection (out col px*6+n <- src col (2px)*6+n (+6))
    t1 = np.zeros((2, 28 * 6, 14 * 6), np.float32)
    for px in range(14):
        for n in range(6):
            t1[0, (2 * px) * 6 + n, px * 6 + n] = 1.0
            t1[1, (2 * px + 1) * 6 + n, px * 6 + n] = 1.0

    # conv2 banded weights: input cols (x*6+c), output cols (ox*15+n).
    w2b = np.zeros((5, 14 * 6, 10 * 15), np.float32)
    for ky in range(5):
        for kx in range(5):
            for ox in range(10):
                x = ox + kx
                w2b[ky, x * 6:(x + 1) * 6, ox * 15:(ox + 1) * 15] = w2[:, :, ky, kx].T
    b2row = np.tile(b2, 10)[None, :]                                  # (1, 150)

    # pool2 selection matrices; output rows ordered (y-major, batch-minor) so
    # that fc1 can consume contiguous B-row slices per conv row y.
    r2 = B * 16 - 6
    s2 = np.zeros((2, 5 * B, r2), np.float32)
    for b in range(B):
        for py in range(5):
            s2[0, py * B + b, b * 16 + 2 * py] = 1.0
            s2[1, py * B + b, b * 16 + 2 * py + 1] = 1.0
    t2 = np.zeros((2, 10 * 15, 5 * 15), np.float32)
    for px in range(5):
        for n in range(15):
            t2[0, (2 * px) * 15 + n, px * 15 + n] = 1.0
            t2[1, (2 * px + 1) * 15 + n, px * 15 + n] = 1.0

    # fc1 weights, split per conv row y, columns permuted from torch's NCHW
    # flatten order (c*25 + y*5 + x) to the kernel's (x*15 + c) column order.
    wf1 = np.zeros((5, 75, 120), np.float32)
    for y in range(5):
        for x in range(5):
            for c in range(15):
                wf1[y, x * 15 + c, :] = f1[:, c * 25 + y * 5 + x]

    # fc3 zero-padded to 128 output lanes (sliced back to 10 in the wrapper).
    wf3 = np.zeros((84, 128), np.float32)
    wf3[:, :10] = f3.T
    bf3 = np.zeros((1, 128), np.float32)
    bf3[0, :10] = g3

    bf16 = jnp.bfloat16
    return dict(
        w1b=jnp.asarray(w1b, bf16), b1=jnp.asarray(b1row, jnp.float32),
        s1=jnp.asarray(s1, bf16), t1=jnp.asarray(t1, bf16),
        w2b=jnp.asarray(w2b, bf16), b2=jnp.asarray(b2row, jnp.float32),
        s2=jnp.asarray(s2, bf16), t2=jnp.asarray(t2, bf16),
        wf1=jnp.asarray(wf1, bf16), bf1=jnp.asarray(g1[None, :], jnp.float32),
        wf2=jnp.asarray(f2.T, bf16), bf2=jnp.asarray(g2[None, :], jnp.float32),
        wf3=jnp.asarray(wf3, bf16), bf3=jnp.asarray(bf3, jnp.float32),
    )


@jax.jit
def lenet_forward(x_nchw, params):
    b = x_nchw.shape[0]
    # (B,3,32,32) -> rows (b*32+y), cols (x*3+c), bf16.  Tiny one-off layout op.
    x2 = jnp.transpose(x_nchw, (0, 2, 3, 1)).reshape(b * 32, 32 * 3)
    x2 = x2.astype(jnp.bfloat16)
    kernel = functools.partial(_lenet_fused_kernel, batch=b)
    out_pad = pl.pallas_call(
        kernel,
        out_shape=jax.ShapeDtypeStruct((b, 128), jnp.float32),
        in_specs=[_VMEM_SPEC] * 15,
        out_specs=_VMEM_SPEC,
    )(x2, params["w1b"], params["b1"], params["s1"], params["t1"],
      params["w2b"], params["b2"], params["s2"], params["t2"],
      params["wf1"], params["bf1"], params["wf2"], params["bf2"],
      params["wf3"], params["bf3"])
    return out_pad[:, :10]


# ----------------------------------------------------------------------------
# Independent references (plain JAX / lax, NCHW throughout)
# ----------------------------------------------------------------------------
def _maxpool2x2_ref(x_nchw):
    b, c, h, w = x_nchw.shape
    return x_nchw.reshape(b, c, h // 2, 2, w // 2, 2).max(axis=(3, 5))


def lenet_reference(x, p, *, bf16):
    """bf16=True mirrors the kernel's precision policy (bf16 matmul inputs,
    f32 accumulate); bf16=False is the exact f32 PyTorch-equivalent forward."""
    dt = jnp.bfloat16 if bf16 else jnp.float32
    dn = ("NCHW", "OIHW", "NCHW")
    a = lax.conv_general_dilated(x.astype(dt), p["conv1_w"].astype(dt),
                                 (1, 1), "VALID", dimension_numbers=dn,
                                 preferred_element_type=jnp.float32)
    a = jnp.maximum(a + p["conv1_b"].reshape(1, -1, 1, 1), 0.0).astype(dt)
    a = _maxpool2x2_ref(a)
    a = lax.conv_general_dilated(a.astype(dt), p["conv2_w"].astype(dt),
                                 (1, 1), "VALID", dimension_numbers=dn,
                                 preferred_element_type=jnp.float32)
    a = jnp.maximum(a + p["conv2_b"].reshape(1, -1, 1, 1), 0.0).astype(dt)
    a = _maxpool2x2_ref(a)
    feat = a.reshape(a.shape[0], -1).astype(dt)
    h = jnp.dot(feat, p["fc1_w"].astype(dt).T,
                preferred_element_type=jnp.float32)
    h = jnp.maximum(h + p["fc1_b"], 0.0).astype(dt)
    h = jnp.dot(h, p["fc2_w"].astype(dt).T,
                preferred_element_type=jnp.float32)
    h = jnp.maximum(h + p["fc2_b"], 0.0).astype(dt)
    out = jnp.dot(h, p["fc3_w"].astype(dt).T,
                  preferred_element_type=jnp.float32)
    return out + p["fc3_b"]


if __name__ == "__main__":
    BATCH = 2
    key = jax.random.PRNGKey(0)
    keys = jax.random.split(key, 11)

    def uniform(k, shape, fan_in):
        bound = 1.0 / (fan_in ** 0.5)
        return jax.random.uniform(k, shape, jnp.float32, -bound, bound)

    params_f32 = dict(
        conv1_w=uniform(keys[0], (6, 3, 5, 5), 3 * 5 * 5),
        conv1_b=uniform(keys[1], (6,), 3 * 5 * 5),
        conv2_w=uniform(keys[2], (15, 6, 5, 5), 6 * 5 * 5),
        conv2_b=uniform(keys[3], (15,), 6 * 5 * 5),
        fc1_w=uniform(keys[4], (120, 375), 375),
        fc1_b=uniform(keys[5], (120,), 375),
        fc2_w=uniform(keys[6], (84, 120), 120),
        fc2_b=uniform(keys[7], (84,), 120),
        fc3_w=uniform(keys[8], (10, 84), 84),
        fc3_b=uniform(keys[9], (10,), 84),
    )
    x = jax.random.normal(keys[10], (BATCH, 3, 32, 32), jnp.float32)

    params = prepare_params(params_f32, BATCH)   # one-time weight prep (hoisted)
    out = jax.block_until_ready(lenet_forward(x, params))
    assert out.shape == (BATCH, 10)

    # Tight check vs. a precision-matched independent reference (same bf16
    # activations / f32 accumulation policy), plus a loose check vs. pure f32.
    ref_matched = lenet_reference(x, params_f32, bf16=True)
    ref_exact = lenet_reference(x, params_f32, bf16=False)
    assert jnp.allclose(out, ref_matched, atol=5e-3, rtol=5e-3), (
        jnp.max(jnp.abs(out - ref_matched)))
    assert jnp.allclose(out, ref_exact, atol=1e-1, rtol=1e-1), (
        jnp.max(jnp.abs(out - ref_exact)))

    print("KERNEL_OK")
</pallas_src>

<mosaic_0001>
module attributes {stable_mosaic.version = 11 : i64} {
  func.func @_lenet_fused_kernel(%arg0: memref<64x96xbf16, #tpu.memory_space<vmem>>, %arg1: memref<5x96x168xbf16, #tpu.memory_space<vmem>>, %arg2: memref<1x168xf32, #tpu.memory_space<vmem>>, %arg3: memref<2x32x60xbf16, #tpu.memory_space<vmem>>, %arg4: memref<2x168x84xbf16, #tpu.memory_space<vmem>>, %arg5: memref<5x84x150xbf16, #tpu.memory_space<vmem>>, %arg6: memref<1x150xf32, #tpu.memory_space<vmem>>, %arg7: memref<2x10x26xbf16, #tpu.memory_space<vmem>>, %arg8: memref<2x150x75xbf16, #tpu.memory_space<vmem>>, %arg9: memref<5x75x120xbf16, #tpu.memory_space<vmem>>, %arg10: memref<1x120xf32, #tpu.memory_space<vmem>>, %arg11: memref<120x84xbf16, #tpu.memory_space<vmem>>, %arg12: memref<1x84xf32, #tpu.memory_space<vmem>>, %arg13: memref<84x128xbf16, #tpu.memory_space<vmem>>, %arg14: memref<1x128xf32, #tpu.memory_space<vmem>>, %arg15: memref<2x128xf32, #tpu.memory_space<vmem>>) attributes {dimension_semantics = [], scalar_prefetch = 0 : i64, scratch_operands = 0 : i64, tpu.core_type = #tpu.core_type<tc>} {
    %c0 = arith.constant 0 : index
    %c0_0 = arith.constant 0 : index
    %0 = vector.load %arg0[%c0, %c0_0] : memref<64x96xbf16, #tpu.memory_space<vmem>>, vector<60x96xbf16>
    %c0_1 = arith.constant 0 : index
    %c0_2 = arith.constant 0 : index
    %c0_3 = arith.constant 0 : index
    %1 = vector.load %arg1[%c0_1, %c0_2, %c0_3] : memref<5x96x168xbf16, #tpu.memory_space<vmem>>, vector<1x96x168xbf16>
    %2 = vector.shape_cast %1 : vector<1x96x168xbf16> to vector<96x168xbf16>
    %cst = arith.constant dense<0.000000e+00> : vector<60x168xf32>
    %3 = tpu.matmul %0, %2, %cst {dimension_numbers = #tpu.dot_dimension_numbers<[1], [0], [0], [1], [0, 0, 1, 1], [], []>} : vector<60x96xbf16>, vector<96x168xbf16>, vector<60x168xf32> -> vector<60x168xf32>
    %c1 = arith.constant 1 : index
    %c0_4 = arith.constant 0 : index
    %4 = vector.load %arg0[%c1, %c0_4] : memref<64x96xbf16, #tpu.memory_space<vmem>>, vector<60x96xbf16>
    %c1_5 = arith.constant 1 : index
    %c0_6 = arith.constant 0 : index
    %c0_7 = arith.constant 0 : index
    %5 = vector.load %arg1[%c1_5, %c0_6, %c0_7] : memref<5x96x168xbf16, #tpu.memory_space<vmem>>, vector<1x96x168xbf16>
    %6 = vector.shape_cast %5 : vector<1x96x168xbf16> to vector<96x168xbf16>
    %cst_8 = arith.constant dense<0.000000e+00> : vector<60x168xf32>
    %7 = tpu.matmul %4, %6, %cst_8 {dimension_numbers = #tpu.dot_dimension_numbers<[1], [0], [0], [1], [0, 0, 1, 1], [], []>} : vector<60x96xbf16>, vector<96x168xbf16>, vector<60x168xf32> -> vector<60x168xf32>
    %8 = arith.addf %3, %7 : vector<60x168xf32>
    %c2 = arith.constant 2 : index
    %c0_9 = arith.constant 0 : index
    %9 = vector.load %arg0[%c2, %c0_9] : memref<64x96xbf16, #tpu.memory_space<vmem>>, vector<60x96xbf16>
    %c2_10 = arith.constant 2 : index
    %c0_11 = arith.constant 0 : index
    %c0_12 = arith.constant 0 : index
    %10 = vector.load %arg1[%c2_10, %c0_11, %c0_12] : memref<5x96x168xbf16, #tpu.memory_space<vmem>>, vector<1x96x168xbf16>
    %11 = vector.shape_cast %10 : vector<1x96x168xbf16> to vector<96x168xbf16>
    %cst_13 = arith.constant dense<0.000000e+00> : vector<60x168xf32>
    %12 = tpu.matmul %9, %11, %cst_13 {dimension_numbers = #tpu.dot_dimension_numbers<[1], [0], [0], [1], [0, 0, 1, 1], [], []>} : vector<60x96xbf16>, vector<96x168xbf16>, vector<60x168xf32> -> vector<60x168xf32>
    %13 = arith.addf %8, %12 : vector<60x168xf32>
    %c3 = arith.constant 3 : index
    %c0_14 = arith.constant 0 : index
    %14 = vector.load %arg0[%c3, %c0_14] : memref<64x96xbf16, #tpu.memory_space<vmem>>, vector<60x96xbf16>
    %c3_15 = arith.constant 3 : index
    %c0_16 = arith.constant 0 : index
    %c0_17 = arith.constant 0 : index
    %15 = vector.load %arg1[%c3_15, %c0_16, %c0_17] : memref<5x96x168xbf16, #tpu.memory_space<vmem>>, vector<1x96x168xbf16>
    %16 = vector.shape_cast %15 : vector<1x96x168xbf16> to vector<96x168xbf16>
    %cst_18 = arith.constant dense<0.000000e+00> : vector<60x168xf32>
    %17 = tpu.matmul %14, %16, %cst_18 {dimension_numbers = #tpu.dot_dimension_numbers<[1], [0], [0], [1], [0, 0, 1, 1], [], []>} : vector<60x96xbf16>, vector<96x168xbf16>, vector<60x168xf32> -> vector<60x168xf32>
    %18 = arith.addf %13, %17 : vector<60x168xf32>
    %c4 = arith.constant 4 : index
    %c0_19 = arith.constant 0 : index
    %19 = vector.load %arg0[%c4, %c0_19] : memref<64x96xbf16, #tpu.memory_space<vmem>>, vector<60x96xbf16>
    %c4_20 = arith.constant 4 : index
    %c0_21 = arith.constant 0 : index
    %c0_22 = arith.constant 0 : index
    %20 = vector.load %arg1[%c4_20, %c0_21, %c0_22] : memref<5x96x168xbf16, #tpu.memory_space<vmem>>, vector<1x96x168xbf16>
    %21 = vector.shape_cast %20 : vector<1x96x168xbf16> to vector<96x168xbf16>
    %cst_23 = arith.constant dense<0.000000e+00> : vector<60x168xf32>
    %22 = tpu.matmul %19, %21, %cst_23 {dimension_numbers = #tpu.dot_dimension_numbers<[1], [0], [0], [1], [0, 0, 1, 1], [], []>} : vector<60x96xbf16>, vector<96x168xbf16>, vector<60x168xf32> -> vector<60x168xf32>
    %23 = arith.addf %18, %22 : vector<60x168xf32>
    %c0_24 = arith.constant 0 : index
    %c0_25 = arith.constant 0 : index
    %24 = vector.load %arg2[%c0_24, %c0_25] : memref<1x168xf32, #tpu.memory_space<vmem>>, vector<1x168xf32>
    %25 = vector.broadcast %24 : vector<1x168xf32> to vector<60x168xf32>
    %26 = arith.addf %23, %25 : vector<60x168xf32>
    %cst_26 = arith.constant 0.000000e+00 : f32
    %27 = vector.broadcast %cst_26 : f32 to vector<60x168xf32>
    %28 = arith.maximumf %26, %27 : vector<60x168xf32>
    %29 = arith.truncf %28 : vector<60x168xf32> to vector<60x168xbf16>
    %c0_27 = arith.constant 0 : index
    %c0_28 = arith.constant 0 : index
    %c0_29 = arith.constant 0 : index
    %30 = vector.load %arg3[%c0_27, %c0_28, %c0_29] : memref<2x32x60xbf16, #tpu.memory_space<vmem>>, vector<1x32x60xbf16>
    %31 = vector.shape_cast %30 : vector<1x32x60xbf16> to vector<32x60xbf16>
    %cst_30 = arith.constant dense<0.000000e+00> : vector<32x168xf32>
    %32 = tpu.matmul %31, %29, %cst_30 {dimension_numbers = #tpu.dot_dimension_numbers<[1], [0], [0], [1], [0, 0, 1, 1], [], []>} : vector<32x60xbf16>, vector<60x168xbf16>, vector<32x168xf32> -> vector<32x168xf32>
    %c1_31 = arith.constant 1 : index
    %c0_32 = arith.constant 0 : index
    %c0_33 = arith.constant 0 : index
    %33 = vector.load %arg3[%c1_31, %c0_32, %c0_33] : memref<2x32x60xbf16, #tpu.memory_space<vmem>>, vector<1x32x60xbf16>
    %34 = vector.shape_cast %33 : vector<1x32x60xbf16> to vector<32x60xbf16>
    %cst_34 = arith.constant dense<0.000000e+00> : vector<32x168xf32>
    %35 = tpu.matmul %34, %29, %cst_34 {dimension_numbers = #tpu.dot_dimension_numbers<[1], [0], [0], [1], [0, 0, 1, 1], [], []>} : vector<32x60xbf16>, vector<60x168xbf16>, vector<32x168xf32> -> vector<32x168xf32>
    %36 = arith.maximumf %32, %35 : vector<32x168xf32>
    %37 = arith.truncf %36 : vector<32x168xf32> to vector<32x168xbf16>
    %c0_35 = arith.constant 0 : index
    %c0_36 = arith.constant 0 : index
    %c0_37 = arith.constant 0 : index
    %38 = vector.load %arg4[%c0_35, %c0_36, %c0_37] : memref<2x168x84xbf16, #tpu.memory_space<vmem>>, vector<1x168x84xbf16>
    %39 = vector.shape_cast %38 : vector<1x168x84xbf16> to vector<168x84xbf16>
    %cst_38 = arith.constant dense<0.000000e+00> : vector<32x84xf32>
    %40 = tpu.matmul %37, %39, %cst_38 {dimension_numbers = #tpu.dot_dimension_numbers<[1], [0], [0], [1], [0, 0, 1, 1], [], []>} : vector<32x168xbf16>, vector<168x84xbf16>, vector<32x84xf32> -> vector<32x84xf32>
    %c1_39 = arith.constant 1 : index
    %c0_40 = arith.constant 0 : index
    %c0_41 = arith.constant 0 : index
    %41 = vector.load %arg4[%c1_39, %c0_40, %c0_41] : memref<2x168x84xbf16, #tpu.memory_space<vmem>>, vector<1x168x84xbf16>
    %42 = vector.shape_cast %41 : vector<1x168x84xbf16> to vector<168x84xbf16>
    %cst_42 = arith.constant dense<0.000000e+00> : vector<32x84xf32>
    %43 = tpu.matmul %37, %42, %cst_42 {dimension_numbers = #tpu.dot_dimension_numbers<[1], [0], [0], [1], [0, 0, 1, 1], [], []>} : vector<32x168xbf16>, vector<168x84xbf16>, vector<32x84xf32> -> vector<32x84xf32>
    %44 = arith.maximumf %40, %43 : vector<32x84xf32>
    %45 = arith.truncf %44 : vector<32x84xf32> to vector<32x84xbf16>
    %46 = vector.extract_strided_slice %45 {offsets = [0, 0], sizes = [26, 84], strides = [1, 1]} : vector<32x84xbf16> to vector<26x84xbf16>
    %c0_43 = arith.constant 0 : index
    %c0_44 = arith.constant 0 : index
    %c0_45 = arith.constant 0 : index
    %47 = vector.load %arg5[%c0_43, %c0_44, %c0_45] : memref<5x84x150xbf16, #tpu.memory_space<vmem>>, vector<1x84x150xbf16>
    %48 = vector.shape_cast %47 : vector<1x84x150xbf16> to vector<84x150xbf16>
    %cst_46 = arith.constant dense<0.000000e+00> : vector<26x150xf32>
    %49 = tpu.matmul %46, %48, %cst_46 {dimension_numbers = #tpu.dot_dimension_numbers<[1], [0], [0], [1], [0, 0, 1, 1], [], []>} : vector<26x84xbf16>, vector<84x150xbf16>, vector<26x150xf32> -> vector<26x150xf32>
    %50 = vector.extract_strided_slice %45 {offsets = [1, 0], sizes = [26, 84], strides = [1, 1]} : vector<32x84xbf16> to vector<26x84xbf16>
    %c1_47 = arith.constant 1 : index
    %c0_48 = arith.constant 0 : index
    %c0_49 = arith.constant 0 : index
    %51 = vector.load %arg5[%c1_47, %c0_48, %c0_49] : memref<5x84x150xbf16, #tpu.memory_space<vmem>>, vector<1x84x150xbf16>
    %52 = vector.shape_cast %51 : vector<1x84x150xbf16> to vector<84x150xbf16>
    %cst_50 = arith.constant dense<0.000000e+00> : vector<26x150xf32>
    %53 = tpu.matmul %50, %52, %cst_50 {dimension_numbers = #tpu.dot_dimension_numbers<[1], [0], [0], [1], [0, 0, 1, 1], [], []>} : vector<26x84xbf16>, vector<84x150xbf16>, vector<26x150xf32> -> vector<26x150xf32>
    %54 = arith.addf %49, %53 : vector<26x150xf32>
    %55 = vector.extract_strided_slice %45 {offsets = [2, 0], sizes = [26, 84], strides = [1, 1]} : vector<32x84xbf16> to vector<26x84xbf16>
    %c2_51 = arith.constant 2 : index
    %c0_52 = arith.constant 0 : index
    %c0_53 = arith.constant 0 : index
    %56 = vector.load %arg5[%c2_51, %c0_52, %c0_53] : memref<5x84x150xbf16, #tpu.memory_space<vmem>>, vector<1x84x150xbf16>
    %57 = vector.shape_cast %56 : vector<1x84x150xbf16> to vector<84x150xbf16>
    %cst_54 = arith.constant dense<0.000000e+00> : vector<26x150xf32>
    %58 = tpu.matmul %55, %57, %cst_54 {dimension_numbers = #tpu.dot_dimension_numbers<[1], [0], [0], [1], [0, 0, 1, 1], [], []>} : vector<26x84xbf16>, vector<84x150xbf16>, vector<26x150xf32> -> vector<26x150xf32>
    %59 = arith.addf %54, %58 : vector<26x150xf32>
    %60 = vector.extract_strided_slice %45 {offsets = [3, 0], sizes = [26, 84], strides = [1, 1]} : vector<32x84xbf16> to vector<26x84xbf16>
    %c3_55 = arith.constant 3 : index
    %c0_56 = arith.constant 0 : index
    %c0_57 = arith.constant 0 : index
    %61 = vector.load %arg5[%c3_55, %c0_56, %c0_57] : memref<5x84x150xbf16, #tpu.memory_space<vmem>>, vector<1x84x150xbf16>
    %62 = vector.shape_cast %61 : vector<1x84x150xbf16> to vector<84x150xbf16>
    %cst_58 = arith.constant dense<0.000000e+00> : vector<26x150xf32>
    %63 = tpu.matmul %60, %62, %cst_58 {dimension_numbers = #tpu.dot_dimension_numbers<[1], [0], [0], [1], [0, 0, 1, 1], [], []>} : vector<26x84xbf16>, vector<84x150xbf16>, vector<26x150xf32> -> vector<26x150xf32>
    %64 = arith.addf %59, %63 : vector<26x150xf32>
    %65 = vector.extract_strided_slice %45 {offsets = [4, 0], sizes = [26, 84], strides = [1, 1]} : vector<32x84xbf16> to vector<26x84xbf16>
    %c4_59 = arith.constant 4 : index
    %c0_60 = arith.constant 0 : index
    %c0_61 = arith.constant 0 : index
    %66 = vector.load %arg5[%c4_59, %c0_60, %c0_61] : memref<5x84x150xbf16, #tpu.memory_space<vmem>>, vector<1x84x150xbf16>
    %67 = vector.shape_cast %66 : vector<1x84x150xbf16> to vector<84x150xbf16>
    %cst_62 = arith.constant dense<0.000000e+00> : vector<26x150xf32>
    %68 = tpu.matmul %65, %67, %cst_62 {dimension_numbers = #tpu.dot_dimension_numbers<[1], [0], [0], [1], [0, 0, 1, 1], [], []>} : vector<26x84xbf16>, vector<84x150xbf16>, vector<26x150xf32> -> vector<26x150xf32>
    %69 = arith.addf %64, %68 : vector<26x150xf32>
    %c0_63 = arith.constant 0 : index
    %c0_64 = arith.constant 0 : index
    %70 = vector.load %arg6[%c0_63, %c0_64] : memref<1x150xf32, #tpu.memory_space<vmem>>, vector<1x150xf32>
    %71 = vector.broadcast %70 : vector<1x150xf32> to vector<26x150xf32>
    %72 = arith.addf %69, %71 : vector<26x150xf32>
    %cst_65 = arith.constant 0.000000e+00 : f32
    %73 = vector.broadcast %cst_65 : f32 to vector<26x150xf32>
    %74 = arith.maximumf %72, %73 : vector<26x150xf32>
    %75 = arith.truncf %74 : vector<26x150xf32> to vector<26x150xbf16>
    %c0_66 = arith.constant 0 : index
    %c0_67 = arith.constant 0 : index
    %c0_68 = arith.constant 0 : index
    %76 = vector.load %arg7[%c0_66, %c0_67, %c0_68] : memref<2x10x26xbf16, #tpu.memory_space<vmem>>, vector<1x10x26xbf16>
    %77 = vector.shape_cast %76 : vector<1x10x26xbf16> to vector<10x26xbf16>
    %cst_69 = arith.constant dense<0.000000e+00> : vector<10x150xf32>
    %78 = tpu.matmul %77, %75, %cst_69 {dimension_numbers = #tpu.dot_dimension_numbers<[1], [0], [0], [1], [0, 0, 1, 1], [], []>} : vector<10x26xbf16>, vector<26x150xbf16>, vector<10x150xf32> -> vector<10x150xf32>
    %c1_70 = arith.constant 1 : index
    %c0_71 = arith.constant 0 : index
    %c0_72 = arith.constant 0 : index
    %79 = vector.load %arg7[%c1_70, %c0_71, %c0_72] : memref<2x10x26xbf16, #tpu.memory_space<vmem>>, vector<1x10x26xbf16>
    %80 = vector.shape_cast %79 : vector<1x10x26xbf16> to vector<10x26xbf16>
    %cst_73 = arith.constant dense<0.000000e+00> : vector<10x150xf32>
    %81 = tpu.matmul %80, %75, %cst_73 {dimension_numbers = #tpu.dot_dimension_numbers<[1], [0], [0], [1], [0, 0, 1, 1], [], []>} : vector<10x26xbf16>, vector<26x150xbf16>, vector<10x150xf32> -> vector<10x150xf32>
    %82 = arith.maximumf %78, %81 : vector<10x150xf32>
    %83 = arith.truncf %82 : vector<10x150xf32> to vector<10x150xbf16>
    %c0_74 = arith.constant 0 : index
    %c0_75 = arith.constant 0 : index
    %c0_76 = arith.constant 0 : index
    %84 = vector.load %arg8[%c0_74, %c0_75, %c0_76] : memref<2x150x75xbf16, #tpu.memory_space<vmem>>, vector<1x150x75xbf16>
    %85 = vector.shape_cast %84 : vector<1x150x75xbf16> to vector<150x75xbf16>
    %cst_77 = arith.constant dense<0.000000e+00> : vector<10x75xf32>
    %86 = tpu.matmul %83, %85, %cst_77 {dimension_numbers = #tpu.dot_dimension_numbers<[1], [0], [0], [1], [0, 0, 1, 1], [], []>} : vector<10x150xbf16>, vector<150x75xbf16>, vector<10x75xf32> -> vector<10x75xf32>
    %c1_78 = arith.constant 1 : index
    %c0_79 = arith.constant 0 : index
    %c0_80 = arith.constant 0 : index
    %87 = vector.load %arg8[%c1_78, %c0_79, %c0_80] : memref<2x150x75xbf16, #tpu.memory_space<vmem>>, vector<1x150x75xbf16>
    %88 = vector.shape_cast %87 : vector<1x150x75xbf16> to vector<150x75xbf16>
    %cst_81 = arith.constant dense<0.000000e+00> : vector<10x75xf32>
    %89 = tpu.matmul %83, %88, %cst_81 {dimension_numbers = #tpu.dot_dimension_numbers<[1], [0], [0], [1], [0, 0, 1, 1], [], []>} : vector<10x150xbf16>, vector<150x75xbf16>, vector<10x75xf32> -> vector<10x75xf32>
    %90 = arith.maximumf %86, %89 : vector<10x75xf32>
    %91 = arith.truncf %90 : vector<10x75xf32> to vector<10x75xbf16>
    %92 = vector.extract_strided_slice %91 {offsets = [0, 0], sizes = [2, 75], strides = [1, 1]} : vector<10x75xbf16> to vector<2x75xbf16>
    %c0_82 = arith.constant 0 : index
    %c0_83 = arith.constant 0 : index
    %c0_84 = arith.constant 0 : index
    %93 = vector.load %arg9[%c0_82, %c0_83, %c0_84] : memref<5x75x120xbf16, #tpu.memory_space<vmem>>, vector<1x75x120xbf16>
    %94 = vector.shape_cast %93 : vector<1x75x120xbf16> to vector<75x120xbf16>
    %cst_85 = arith.constant dense<0.000000e+00> : vector<2x120xf32>
    %95 = tpu.matmul %92, %94, %cst_85 {dimension_numbers = #tpu.dot_dimension_numbers<[1], [0], [0], [1], [0, 0, 1, 1], [], []>} : vector<2x75xbf16>, vector<75x120xbf16>, vector<2x120xf32> -> vector<2x120xf32>
    %96 = vector.extract_strided_slice %91 {offsets = [2, 0], sizes = [2, 75], strides = [1, 1]} : vector<10x75xbf16> to vector<2x75xbf16>
    %c1_86 = arith.constant 1 : index
    %c0_87 = arith.constant 0 : index
    %c0_88 = arith.constant 0 : index
    %97 = vector.load %arg9[%c1_86, %c0_87, %c0_88] : memref<5x75x120xbf16, #tpu.memory_space<vmem>>, vector<1x75x120xbf16>
    %98 = vector.shape_cast %97 : vector<1x75x120xbf16> to vector<75x120xbf16>
    %cst_89 = arith.constant dense<0.000000e+00> : vector<2x120xf32>
    %99 = tpu.matmul %96, %98, %cst_89 {dimension_numbers = #tpu.dot_dimension_numbers<[1], [0], [0], [1], [0, 0, 1, 1], [], []>} : vector<2x75xbf16>, vector<75x120xbf16>, vector<2x120xf32> -> vector<2x120xf32>
    %100 = arith.addf %95, %99 : vector<2x120xf32>
    %101 = vector.extract_strided_slice %91 {offsets = [4, 0], sizes = [2, 75], strides = [1, 1]} : vector<10x75xbf16> to vector<2x75xbf16>
    %c2_90 = arith.constant 2 : index
    %c0_91 = arith.constant 0 : index
    %c0_92 = arith.constant 0 : index
    %102 = vector.load %arg9[%c2_90, %c0_91, %c0_92] : memref<5x75x120xbf16, #tpu.memory_space<vmem>>, vector<1x75x120xbf16>
    %103 = vector.shape_cast %102 : vector<1x75x120xbf16> to vector<75x120xbf16>
    %cst_93 = arith.constant dense<0.000000e+00> : vector<2x120xf32>
    %104 = tpu.matmul %101, %103, %cst_93 {dimension_numbers = #tpu.dot_dimension_numbers<[1], [0], [0], [1], [0, 0, 1, 1], [], []>} : vector<2x75xbf16>, vector<75x120xbf16>, vector<2x120xf32> -> vector<2x120xf32>
    %105 = arith.addf %100, %104 : vector<2x120xf32>
    %106 = vector.extract_strided_slice %91 {offsets = [6, 0], sizes = [2, 75], strides = [1, 1]} : vector<10x75xbf16> to vector<2x75xbf16>
    %c3_94 = arith.constant 3 : index
    %c0_95 = arith.constant 0 : index
    %c0_96 = arith.constant 0 : index
    %107 = vector.load %arg9[%c3_94, %c0_95, %c0_96] : memref<5x75x120xbf16, #tpu.memory_space<vmem>>, vector<1x75x120xbf16>
    %108 = vector.shape_cast %107 : vector<1x75x120xbf16> to vector<75x120xbf16>
    %cst_97 = arith.constant dense<0.000000e+00> : vector<2x120xf32>
    %109 = tpu.matmul %106, %108, %cst_97 {dimension_numbers = #tpu.dot_dimension_numbers<[1], [0], [0], [1], [0, 0, 1, 1], [], []>} : vector<2x75xbf16>, vector<75x120xbf16>, vector<2x120xf32> -> vector<2x120xf32>
    %110 = arith.addf %105, %109 : vector<2x120xf32>
    %111 = vector.extract_strided_slice %91 {offsets = [8, 0], sizes = [2, 75], strides = [1, 1]} : vector<10x75xbf16> to vector<2x75xbf16>
    %c4_98 = arith.constant 4 : index
    %c0_99 = arith.constant 0 : index
    %c0_100 = arith.constant 0 : index
    %112 = vector.load %arg9[%c4_98, %c0_99, %c0_100] : memref<5x75x120xbf16, #tpu.memory_space<vmem>>, vector<1x75x120xbf16>
    %113 = vector.shape_cast %112 : vector<1x75x120xbf16> to vector<75x120xbf16>
    %cst_101 = arith.constant dense<0.000000e+00> : vector<2x120xf32>
    %114 = tpu.matmul %111, %113, %cst_101 {dimension_numbers = #tpu.dot_dimension_numbers<[1], [0], [0], [1], [0, 0, 1, 1], [], []>} : vector<2x75xbf16>, vector<75x120xbf16>, vector<2x120xf32> -> vector<2x120xf32>
    %115 = arith.addf %110, %114 : vector<2x120xf32>
    %c0_102 = arith.constant 0 : index
    %c0_103 = arith.constant 0 : index
    %116 = vector.load %arg10[%c0_102, %c0_103] : memref<1x120xf32, #tpu.memory_space<vmem>>, vector<1x120xf32>
    %117 = vector.broadcast %116 : vector<1x120xf32> to vector<2x120xf32>
    %118 = arith.addf %115, %117 : vector<2x120xf32>
    %cst_104 = arith.constant 0.000000e+00 : f32
    %119 = vector.broadcast %cst_104 : f32 to vector<2x120xf32>
    %120 = arith.maximumf %118, %119 : vector<2x120xf32>
    %121 = arith.truncf %120 : vector<2x120xf32> to vector<2x120xbf16>
    %c0_105 = arith.constant 0 : index
    %c0_106 = arith.constant 0 : index
    %122 = vector.load %arg11[%c0_105, %c0_106] : memref<120x84xbf16, #tpu.memory_space<vmem>>, vector<120x84xbf16>
    %cst_107 = arith.constant dense<0.000000e+00> : vector<2x84xf32>
    %123 = tpu.matmul %121, %122, %cst_107 {dimension_numbers = #tpu.dot_dimension_numbers<[1], [0], [0], [1], [0, 0, 1, 1], [], []>} : vector<2x120xbf16>, vector<120x84xbf16>, vector<2x84xf32> -> vector<2x84xf32>
    %c0_108 = arith.constant 0 : index
    %c0_109 = arith.constant 0 : index
    %124 = vector.load %arg12[%c0_108, %c0_109] : memref<1x84xf32, #tpu.memory_space<vmem>>, vector<1x84xf32>
    %125 = vector.broadcast %124 : vector<1x84xf32> to vector<2x84xf32>
    %126 = arith.addf %123, %125 : vector<2x84xf32>
    %cst_110 = arith.constant 0.000000e+00 : f32
    %127 = vector.broadcast %cst_110 : f32 to vector<2x84xf32>
    %128 = arith.maximumf %126, %127 : vector<2x84xf32>
    %129 = arith.truncf %128 : vector<2x84xf32> to vector<2x84xbf16>
    %c0_111 = arith.constant 0 : index
    %c0_112 = arith.constant 0 : index
    %130 = vector.load %arg13[%c0_111, %c0_112] : memref<84x128xbf16, #tpu.memory_space<vmem>>, vector<84x128xbf16>
    %cst_113 = arith.constant dense<0.000000e+00> : vector<2x128xf32>
    %131 = tpu.matmul %129, %130, %cst_113 {dimension_numbers = #tpu.dot_dimension_numbers<[1], [0], [0], [1], [0, 0, 1, 1], [], []>} : vector<2x84xbf16>, vector<84x128xbf16>, vector<2x128xf32> -> vector<2x128xf32>
    %c0_114 = arith.constant 0 : index
    %c0_115 = arith.constant 0 : index
    %132 = vector.load %arg14[%c0_114, %c0_115] : memref<1x128xf32, #tpu.memory_space<vmem>>, vector<1x128xf32>
    %133 = vector.broadcast %132 : vector<1x128xf32> to vector<2x128xf32>
    %134 = arith.addf %131, %133 : vector<2x128xf32>
    %c0_116 = arith.constant 0 : index
    %c0_117 = arith.constant 0 : index
    %135 = vector.load %arg15[%c0_116, %c0_117] : memref<2x128xf32, #tpu.memory_space<vmem>>, vector<2x128xf32>
    tpu.vector_store %arg15[%c0_116, %c0_117], %134 {strides = array<i32>} : memref<2x128xf32, #tpu.memory_space<vmem>>, vector<2x128xf32>,
    return
  }
}

</mosaic_0001>

<bundles_post_ra>
// kernel: lenet_forward.1
= control target key start
LH: loop header
LB: loop body
LE: loop exit
PB: predicated region body
PF: predicated region fallthrough
CT: control target
= control target key end

     0   :  { %v5393_v2 = vmov 0   ;;  %vm106_vm0 = vsmask.f32 7424  ;;  %vm198_vm1 = vcmask 785408   ;;  %vm836_vm2 = vcmask 1045504   ;;  %s5377_s0 = inlined_call_operand.vmem [shape: bf16[64,96], index: 0, kind: input, shape index: {}]   ;;  %s5378_s1 = inlined_call_operand.vmem [shape: bf16[5,96,168], index: 1, kind: input, shape index: {}]   ;;  %s5379_s2 = inlined_call_operand.vmem [shape: f32[1,168], index: 2, kind: input, shape index: {}]   ;;  %s5380_s3 = inlined_call_operand.vmem [shape: bf16[2,32,60], index: 3, kind: input, shape index: {}]   ;;  %s5381_s4 = inlined_call_operand.vmem [shape: bf16[2,168,84], index: 4, kind: input, shape index: {}]   ;;  %s5382_s5 = inlined_call_operand.vmem [shape: bf16[5,84,150], index: 5, kind: input, shape index: {}]   ;;  %s5383_s6 = inlined_call_operand.vmem [shape: f32[1,150], index: 6, kind: input, shape index: {}]   ;;  %s5384_s7 = inlined_call_operand.vmem [shape: bf16[2,10,26], index: 7, kind: input, shape index: {}]   ;;  %s5385_s8 = inlined_call_operand.vmem [shape: bf16[2,150,75], index: 8, kind: input, shape index: {}]   ;;  %s5386_s9 = inlined_call_operand.vmem [shape: bf16[5,75,120], index: 9, kind: input, shape index: {}]   ;;  %s5387_s10 = inlined_call_operand.vmem [shape: f32[1,120], index: 10, kind: input, shape index: {}]   ;;  %s5388_s11 = inlined_call_operand.vmem [shape: bf16[120,84], index: 11, kind: input, shape index: {}]   ;;  %s5389_s12 = inlined_call_operand.vmem [shape: f32[1,84], index: 12, kind: input, shape index: {}]   ;;  %s5390_s13 = inlined_call_operand.vmem [shape: bf16[84,128], index: 13, kind: input, shape index: {}]   ;;  %s5391_s14 = inlined_call_operand.vmem [shape: f32[1,128], index: 14, kind: input, shape index: {}]   ;;  %s5392_s15 = inlined_call_operand.hbm [shape: f32[2,128], index: 15, kind: output, shape index: {}]  }
   0x1   :  { %v3915_v0 = vld [vmem:[%s5378_s1 + $0xb4] ss:$8 sps:$4 sm:$0xff]   ;;  %243 = vmatprep.mubr.bf16.mxu0 %v5393_v2  ;;  %388 = vmatprep.mubr.bf16.mxu1 %v5393_v2  ;;  %v3919_v3 = vld [vmem:[%s5378_s1 + $0xb0] ss:$8 sps:$4 sm:$0xff]   ;;  %v3921_v5 = vld [vmem:[%s5378_s1 + $0xa4] ss:$8 sps:$4 sm:$0xff]  }
   0x2   :  { %v3917_v1 = vld [vmem:[%s5378_s1 + $0x54] ss:$8 sps:$4 sm:$0xff]   ;;  %215 = vmatprep.subr.bf16.mxu0 %v3915_v0  ;;  %v3920_v4 = vld [vmem:[%s5378_s1 + $0x50] ss:$8 sps:$4 sm:$0xff]   ;;  %v3923_v6 = vld [vmem:[%s5378_s1 + $0x44] ss:$8 sps:$4 sm:$0xff]  }
   0x3   :  { %360 = vmatprep.subr.bf16.mxu1 %v3917_v1  ;;  %216 = vmatpush1.bf16.msra.mxu0 %v3919_v3  ;;  %v3925_v7 = vld [vmem:[%s5378_s1 + $0xa0] ss:$8 sps:$4 sm:$0xff]   ;;  %v3927_v9 = vld [vmem:[%s5378_s1 + $0x94] ss:$8 sps:$4 sm:$0xff]   ;;  %v3931_v11 = vld [vmem:[%s5378_s1 + $0x90] ss:$8 sps:$4 sm:$0xff]  }
   0x4   :  { %361 = vmatpush1.bf16.msra.mxu1 %v3920_v4  ;;  %217 = vmatprep.subr.bf16.mxu0 %v3921_v5  ;;  %v3926_v8 = vld [vmem:[%s5378_s1 + $0x40] ss:$8 sps:$4 sm:$0xff]   ;;  %v3929_v10 = vld [vmem:[%s5378_s1 + $0x34] ss:$8 sps:$4 sm:$0xff]   ;;  %v3932_v12 = vld [vmem:[%s5378_s1 + $0x30] ss:$8 sps:$4 sm:$0xff]  }
   0x5   :  { %362 = vmatprep.subr.bf16.mxu1 %v3923_v6  ;;  %v3933_v13 = vld [vmem:[%s5378_s1 + $0x84] ss:$8 sps:$4 sm:$0xff]   ;;  %v3937_v15 = vld [vmem:[%s5378_s1 + $0x80] ss:$8 sps:$4 sm:$0xff]   ;;  %v3939_v17 = vld [vmem:[%s5378_s1 + $0x74] ss:$8 sps:$4 sm:$0xff]  }
   0x6   :  { %v3935_v14 = vld [vmem:[%s5378_s1 + $0x24] ss:$8 sps:$4 sm:$0xff]   ;;  %v3938_v16 = vld [vmem:[%s5378_s1 + $0x20] ss:$8 sps:$4 sm:$0xff]   ;;  %v3941_v18 = vld [vmem:[%s5378_s1 + $0x14] ss:$8 sps:$4 sm:$0xff]  }
   0x7   :  { %218 = vmatpush1.bf16.msra.mxu0 %v3925_v7  ;;  %v3943_v19 = vld [vmem:[%s5378_s1 + $0x70] ss:$8 sps:$4 sm:$0xff]   ;;  %v3945_v21 = vld [vmem:[%s5378_s1 + $0x64] ss:$8 sps:$4 sm:$0xff]   ;;  %v52_v23 = vld [vmem:[%s5377_s0] sm:$0xf] }
   0x8   :  { %363 = vmatpush1.bf16.msra.mxu1 %v3926_v8  ;;  %219 = vmatprep.subr.bf16.mxu0 %v3927_v9  ;;  %v3944_v20 = vld [vmem:[%s5378_s1 + $0x10] ss:$8 sps:$4 sm:$0xff]   ;;  %v3947_v22 = vld [vmem:[%s5378_s1 + $0x4] ss:$8 sps:$4 sm:$0xff]   ;;  %v3949_v27 = vld [vmem:[%s5378_s1 + $0x60] ss:$8 sps:$4 sm:$0xff]  }
   0x9   :  { %364 = vmatprep.subr.bf16.mxu1 %v3929_v10  ;;  %v4366_v24 = vld [vmem:[%s5377_s0 + $0x4] sm:$0xf]  ;;  %v4372_v26 = vld [vmem:[%s5377_s0 + $0x8] sm:$0xff]   ;;  %v4384_v32 = vld [vmem:[%s5377_s0 + $0x10] sm:$0xff]   ;;  %vm446_vm3 = vcmask 1046528  }
   0xa   :  { %v3316_v25 = vcombine.low %v52_v23, %v4366_v24  ;;  %v115_v30 = vshll.u32 %v4372_v26, 16  ;;  %v3950_v31 = vld [vmem:[%s5378_s1] ss:$8 sps:$4 sm:$0xff]   ;;  %v3956_v35 = vld [vmem:[%s5378_s1 + $0x114] ss:$8 sps:$4 sm:$0xff]   ;;  %v119_v38 = vshrl.u32 %v4372_v26, 16 }
   0xb   :  { %220 = vmatpush1.bf16.msra.mxu0 %v3931_v11  ;;  %v3959_v36 = vld [vmem:[%s5378_s1 + $0x174] ss:$8 sps:$4 sm:$0xff]   ;;  %v123_v39 = vshll.u32 %v4384_v32, 16  ;;  %v3954_v40 = vld [vmem:[%s5378_s1 + $0x110] ss:$8 sps:$4 sm:$0xff]   ;;  %v838_v47 = vrot.slane %v4372_v26, 2 }
   0xc   :  { %365 = vmatpush1.bf16.msra.mxu1 %v3932_v12  ;;  %221 = vmatprep.subr.bf16.mxu0 %v3933_v13  ;;  %v108_v28 = vshrl.u32 %v3316_v25, 16  ;;  %v110_v29 = vshll.u32 %v3316_v25, 16  ;;  %v117_v34 = vrot.slane %v115_v30, 1  ;;  %v3957_v41 = vld [vmem:[%s5378_s1 + $0x170] ss:$8 sps:$4 sm:$0xff]   ;;  %v840_v48 = vrot.slane %v4384_v32, 2 }
   0xd   :  { %366 = vmatprep.subr.bf16.mxu1 %v3935_v14  ;;  %v4406_v43 = vld [vmem:[%s5377_s0 + $0x18] sm:$0xf]  ;;  %v72_v44 = vld [vmem:[%s5377_s0 + $0x1c] sm:$0x7]  ;;  %v3962_v45 = vld [vmem:[%s5378_s1 + $0x104] ss:$8 sps:$4 sm:$0xff]  }
   0xe   :  { %v112_v33 = vrot.slane %v110_v29, 1  ;;  %v3965_v46 = vld [vmem:[%s5378_s1 + $0x164] ss:$8 sps:$4 sm:$0xff]   ;;  %v121_v49 = vor.u32 %v119_v38, %v117_v34  ;;  %v125_v50 = vrot.slane %v123_v39, 1  ;;  %v4426_v51 = vcombine.low %v4406_v43, %v72_v44  ;;  %v3960_v52 = vld [vmem:[%s5378_s1 + $0x100] ss:$8 sps:$4 sm:$0xff]  }
   0xf   :  { %222 = vmatpush1.bf16.msra.mxu0 %v3937_v15  ;;  %v3963_v53 = vld [vmem:[%s5378_s1 + $0x160] ss:$8 sps:$4 sm:$0xff]   ;;  %v4439_v54 = vsel %vm836_vm2, %v838_v47, %v840_v48  ;;  %v3969_v55 = vld [vmem:[%s5378_s1 + $0xf4] ss:$8 sps:$4 sm:$0xff]   ;;  %v127_v58 = vshrl.u32 %v4384_v32, 16  ;;  %v642_v9 = vrot.slane %v115_v30, 2 }
  0x10   :  { %367 = vmatpush1.bf16.msra.mxu1 %v3938_v16  ;;  %223 = vmatprep.subr.bf16.mxu0 %v3939_v17  ;;  %v113_v37 = vor.u32 %v112_v33, %v108_v28  ;;  %v3972_v56 = vld [vmem:[%s5378_s1 + $0x154] ss:$8 sps:$4 sm:$0xff]   ;;  %v126_v57 = vsel %vm106_vm0, %v121_v49, %v125_v50  ;;  %v131_v59 = vshll.u32 %v4426_v51, 16  ;;  %v3967_v60 = vld [vmem:[%s5378_s1 + $0xf0] ss:$8 sps:$4 sm:$0xff]   ;;  %v641_v10 = vrot.slane %v119_v38, 1 }
  0x11   :  { %368 = vmatprep.subr.bf16.mxu1 %v3941_v18  ;;  %v3970_v61 = vld [vmem:[%s5378_s1 + $0x150] ss:$8 sps:$4 sm:$0xff]   ;;  %v3975_v62 = vld [vmem:[%s5378_s1 + $0xe4] ss:$8 sps:$4 sm:$0xff]   ;;  %v3973_v0 = vld [vmem:[%s5378_s1 + $0xe0] ss:$8 sps:$4 sm:$0xff]   ;;  %v129_v1 = vor.u32 %v127_v58, %v125_v50 }
  0x12   :  { %v118_v42 = vsel %vm106_vm0, %v113_v37, %v117_v34  ;;  %v3978_v63 = vld [vmem:[%s5378_s1 + $0x144] ss:$8 sps:$4 sm:$0xff]   ;;  %v133_v3 = vrot.slane %v131_v59, 1  ;;  %v3976_v4 = vld [vmem:[%s5378_s1 + $0x140] ss:$8 sps:$4 sm:$0xff]   ;;  %v645_v23 = vrot.slane %v127_v58, 1 }
  0x13   :  { %224 = vmatpush1.bf16.msra.mxu0 %v3943_v19  ;;  %v429_v5 = vld [vmem:[%s5377_s0] sm:$0xe]  ;;  %v3982_v6 = vld [vmem:[%s5378_s1 + $0xd4] ss:$8 sps:$4 sm:$0xff]   ;;  %v3980_v12 = vld [vmem:[%s5378_s1 + $0xd0] ss:$8 sps:$4 sm:$0xff]  }
  0x14   :  { %369 = vmatpush1.bf16.msra.mxu1 %v3944_v20  ;;  %225 = vmatprep.subr.bf16.mxu0 %v3945_v21  ;;  %v3985_v7 = vld [vmem:[%s5378_s1 + $0x134] ss:$8 sps:$4 sm:$0xff]   ;;  %v3365_v8 = vcombine.low %v429_v5, %v4366_v24  ;;  %v134_v11 = vsel %vm106_vm0, %v129_v1, %v133_v3  ;;  %v3983_v13 = vld [vmem:[%s5378_s1 + $0x130] ss:$8 sps:$4 sm:$0xff]   ;;  %v3988_v14 = vld [vmem:[%s5378_s1 + $0xc4] ss:$8 sps:$4 sm:$0xff]  }
  0x15   :  { %370 = vmatprep.subr.bf16.mxu1 %v3947_v22  ;;  %v615_v15 = vld [vmem:[%s5377_s0 + $0x1c] sm:$0xf]  ;;  %v3991_v16 = vld [vmem:[%s5378_s1 + $0x124] ss:$8 sps:$4 sm:$0xff]   ;;  %v135_v20 = vshrl.u32 %v4426_v51, 16  ;;  %v448_v21 = vrot.slane %v4372_v26, 1 }
  0x16   :  { %v634_v17 = vshrl.u32 %v3365_v8, 16  ;;  %v637_v18 = vshll.u32 %v3365_v8, 16  ;;  %v4502_v19 = vcombine.low %v4406_v43, %v615_v15  ;;  %v450_v22 = vrot.slane %v4384_v32, 1  ;;  %v3989_v28 = vld [vmem:[%s5378_s1 + $0x120] ss:$8 sps:$4 sm:$0xff]  }
  0x17   :  { %226 = vmatpush1.bf16.msra.mxu0 %v3949_v27  ;;  %v3986_v27 = vld [vmem:[%s5378_s1 + $0xc0] ss:$8 sps:$4 sm:$0xff]   ;;  %v447_v29 = vrot.slane %v3365_v8, 1  ;;  %vm632_vm4 = vsmask.f32 6400  ;;  %v137_v38 = vor.u32 %v135_v20, %v133_v3 }
  0x18   :  { %371 = vmatpush1.bf16.msra.mxu1 %v3950_v31  ;;  %530 = vmatprep.subr.bf16.mxu0 %v3956_v35  ;;  %v3995_v30 = vld [vmem:[%s5378_s1 + $0x1d4] ss:$8 sps:$4 sm:$0xff]   ;;  %v646_v31 = vrot.slane %v123_v39, 2  ;;  %v636_v33 = vrot.slane %v634_v17, 1  ;;  %v639_v34 = vrot.slane %v637_v18, 2  ;;  %v650_v35 = vshrl.u32 %v4502_v19, 16 }
  0x19   :  { %734 = vmatprep.subr.bf16.mxu1 %v3959_v36  ;;  %v653_v36 = vshll.u32 %v4502_v19, 16  ;;  %v819_v37 = vld [vmem:[%s5377_s0] sm:$0xc]  ;;  %v4001_v50 = vld [vmem:[%s5378_s1 + $0x1b4] ss:$8 sps:$4 sm:$0xff]  }
  0x1a   :  { %3332 = vmatmul.mubr.msk.bf16.vlgmr.msra.gmra.mxu0 %vm198_vm1, %v118_v42  ;;  %v640_v44 = vor.u32 %v639_v34, %v636_v33  ;;  %v647_v49 = vor.u32 %v646_v31, %v645_v23  ;;  %v4005_v58 = vld [vmem:[%s5378_s1 + $0x1a4] ss:$8 sps:$4 sm:$0xff]   ;;  %v4003_v59 = vld [vmem:[%s5378_s1 + $0x1a0] ss:$8 sps:$4 sm:$0xff]  }
  0x1b   :  { %3349 = vmatmul.mubr.msk.bf16.vlgmr.msra.gmra.mxu1 %vm198_vm1, %v3316_v25  ;;  %253 = vmatprep.mubr.bf16.mxu0 %v5393_v2  ;;  %v59_v25 = vld [vmem:[%s5377_s0 + $0x1c] sm:$0x3]  ;;  %v4009_v3 = vld [vmem:[%s5378_s1 + $0x180] ss:$8 sps:$4 sm:$0xff]  }
  0x1c   :  { %398 = vmatprep.mubr.bf16.mxu1 %v5393_v2  ;;  %531 = vmatpush1.bf16.msra.mxu0 %v3954_v40  ;;  %v3336_v40 = vcombine.low %v4406_v43, %v59_v25  ;;  %v643_v43 = vor.u32 %v642_v9, %v641_v10 }
  0x1d   :  { %735 = vmatpush1.bf16.msra.mxu1 %v3957_v41  ;;  %532 = vmatprep.subr.bf16.mxu0 %v3962_v45  ;;  %v3423_v41 = vcombine.low %v819_v37, %v4366_v24  ;;  %v3993_v24 = vld [vmem:[%s5378_s1 + $0x1d0] ss:$8 sps:$4 sm:$0xff]   ;;  %v449_v45 = vsel %vm446_vm3, %v447_v29, %v448_v21 }
  0x1e   :  { %736 = vmatprep.subr.bf16.mxu1 %v3965_v46  ;;  %v644_v46 = vsel %vm632_vm4, %v640_v44, %v643_v43 }
  0x1f   :  { %v837_v39 = vrot.slane %v3423_v41, 2 }
  0x20   :  { %533 = vmatpush1.bf16.msra.mxu0 %v3960_v52  ;;  %v3999_v52 = vld [vmem:[%s5378_s1 + $0x1b0] ss:$8 sps:$4 sm:$0xff]  }
  0x21   :  { %737 = vmatpush1.bf16.msra.mxu1 %v3963_v53  ;;  %534 = vmatprep.subr.bf16.mxu0 %v3969_v55  ;;  %v839_v42 = vsel %vm836_vm2, %v837_v39, %v838_v47  ;;  %v3996_v47 = vld [vmem:[%s5378_s1 + $0x1c0] ss:$8 sps:$4 sm:$0xff]   ;;  %v451_v53 = vsel %vm446_vm3, %v448_v21, %v450_v22  ;;  %v648_v55 = vsel %vm632_vm4, %v643_v43, %v647_v49 }
  0x22   :  { %738 = vmatprep.subr.bf16.mxu1 %v3972_v56  ;;  %3333 = vmatmul.mubr.msk.bf16.gmra.mxu0 %vm198_vm1, %v126_v57  ;;  %v652_v56 = vrot.slane %v650_v35, 1  ;;  %v655_v57 = vrot.slane %v653_v36, 2 }
  0x23   :  { %3350 = vmatmul.mubr.msk.bf16.gmra.mxu1 %vm198_vm1, %v4372_v26  ;;  %263 = vmatprep.mubr.bf16.mxu0 %v5393_v2  ;;  %v3998_v26 = vld [vmem:[%s5378_s1 + $0x1c4] ss:$8 sps:$4 sm:$0xff]  }
  0x24   :  { %408 = vmatprep.mubr.bf16.mxu1 %v5393_v2  ;;  %535 = vmatpush1.bf16.msra.mxu0 %v3967_v60  ;;  %v452_v60 = vrot.slane %v4426_v51, 1  ;;  %v4011_v51 = vld [vmem:[%s5378_s1 + $0x184] ss:$8 sps:$4 sm:$0xff]  }
  0x25   :  { %739 = vmatpush1.bf16.msra.mxu1 %v3970_v61  ;;  %536 = vmatprep.subr.bf16.mxu0 %v3975_v62  ;;  %v656_v61 = vor.u32 %v655_v57, %v652_v56  ;;  %v4008_v62 = vld [vmem:[%s5378_s1 + $0x194] ss:$8 sps:$4 sm:$0xff]  }
  0x26   :  { %740 = vmatprep.subr.bf16.mxu1 %v3978_v63  ;;  %v4006_v63 = vld [vmem:[%s5378_s1 + $0x190] ss:$8 sps:$4 sm:$0xff]  }
  0x27   :  { %v657_v1 = vsel %vm632_vm4, %v647_v49, %v656_v61 }
  0x28   :  { %537 = vmatpush1.bf16.msra.mxu0 %v3973_v0  ;;  %v453_v0 = vsel %vm446_vm3, %v450_v22, %v452_v60 }
  0x29   :  { %741 = vmatpush1.bf16.msra.mxu1 %v3976_v4  ;;  %538 = vmatprep.subr.bf16.mxu0 %v3982_v6  ;;  %v842_v4 = vrot.slane %v4502_v19, 2 }
  0x2a   :  { %742 = vmatprep.subr.bf16.mxu1 %v3985_v7  ;;  %3334 = vmatmul.mubr.msk.bf16.gmra.mxu0 %vm198_vm1, %v134_v11 }
  0x2b   :  { %3351 = vmatmul.mubr.msk.bf16.gmra.mxu1 %vm198_vm1, %v4384_v32  ;;  %273 = vmatprep.mubr.bf16.mxu0 %v5393_v2  ;;  %v843_v5 = vsel %vm836_vm2, %v840_v48, %v842_v4 }
  0x2c   :  { %418 = vmatprep.mubr.bf16.mxu1 %v5393_v2  ;;  %539 = vmatpush1.bf16.msra.mxu0 %v3980_v12 }
  0x2d   :  { %743 = vmatpush1.bf16.msra.mxu1 %v3983_v13  ;;  %540 = vmatprep.subr.bf16.mxu0 %v3988_v14 }
  0x2e   :  { %744 = vmatprep.subr.bf16.mxu1 %v3991_v16 }
  0x30   :  { %541 = vmatpush1.bf16.msra.mxu0 %v3986_v27 }
  0x31   :  { %745 = vmatpush1.bf16.msra.mxu1 %v3989_v28  ;;  %920 = vmatprep.subr.bf16.mxu0 %v3995_v30 }
  0x32   :  { %3335 = vmatmul.mubr.msk.bf16.gmra.mxu0 %vm198_vm1, %v137_v38 }
  0x33   :  { %3352 = vmatmul.mubr.msk.bf16.gmra.mxu1 %vm198_vm1, %v3336_v40  ;;  %558 = vmatprep.mubr.bf16.mxu0 %v5393_v2 }
  0x34   :  { %762 = vmatprep.mubr.bf16.mxu1 %v5393_v2 }
  0x3a   :  { %3378 = vmatmul.mubr.msk.bf16.vlgmr.msra.gmra.mxu0 %vm198_vm1, %v449_v45 }
  0x3b   :  { %3407 = vmatmul.mubr.msk.bf16.vlgmr.msra.gmra.mxu1 %vm198_vm1, %v644_v46  ;;  %568 = vmatprep.mubr.bf16.mxu0 %v5393_v2 }
  0x3c   :  { %772 = vmatprep.mubr.bf16.mxu1 %v5393_v2  ;;  %921 = vmatpush1.bf16.msra.mxu0 %v3993_v24 }
  0x3d   :  { %922 = vmatprep.subr.bf16.mxu0 %v3998_v26 }
  0x40   :  { %923 = vmatpush1.bf16.msra.mxu0 %v3996_v47 }
  0x41   :  { %924 = vmatprep.subr.bf16.mxu0 %v4001_v50 }
  0x42   :  { %3379 = vmatmul.mubr.msk.bf16.gmra.mxu0 %vm198_vm1, %v451_v53 }
  0x43   :  { %3408 = vmatmul.mubr.msk.bf16.gmra.mxu1 %vm198_vm1, %v648_v55  ;;  %578 = vmatprep.mubr.bf16.mxu0 %v5393_v2 }
  0x44   :  { %782 = vmatprep.mubr.bf16.mxu1 %v5393_v2  ;;  %925 = vmatpush1.bf16.msra.mxu0 %v3999_v52 }
  0x45   :  { %926 = vmatprep.subr.bf16.mxu0 %v4005_v58 }
  0x48   :  { %927 = vmatpush1.bf16.msra.mxu0 %v4003_v59 }
  0x49   :  { %928 = vmatprep.subr.bf16.mxu0 %v4008_v62 }
  0x4a   :  { %3380 = vmatmul.mubr.msk.bf16.gmra.mxu0 %vm198_vm1, %v453_v0 }
  0x4b   :  { %3409 = vmatmul.mubr.msk.bf16.gmra.mxu1 %vm198_vm1, %v657_v1  ;;  %588 = vmatprep.mubr.bf16.mxu0 %v5393_v2 }
  0x4c   :  { %792 = vmatprep.mubr.bf16.mxu1 %v5393_v2  ;;  %929 = vmatpush1.bf16.msra.mxu0 %v4006_v63 }
  0x4d   :  { %930 = vmatprep.subr.bf16.mxu0 %v4011_v51 }
  0x50   :  { %931 = vmatpush1.bf16.msra.mxu0 %v4009_v3 }
  0x51   :  { %1319 = vmatprep.subr.bf16.mxu0 %v5393_v2 }
  0x52   :  { %3381 = vmatmul.mubr.msk.bf16.gmra.mxu0 %vm198_vm1, %v452_v60 }
  0x53   :  { %3410 = vmatmul.mubr.msk.bf16.gmra.mxu1 %vm198_vm1, %v656_v61  ;;  %948 = vmatprep.mubr.bf16.mxu0 %v5393_v2 }
  0x54   :  { %1117 = vmatprep.mubr.bf16.mxu1 %v5393_v2 }
  0x5a   :  { %3436 = vmatmul.mubr.msk.bf16.vlgmr.msra.gmra.mxu0 %vm198_vm1, %v839_v42 }
  0x5b   :  { %958 = vmatprep.mubr.bf16.mxu0 %v5393_v2 }
  0x62   :  { %3437 = vmatmul.mubr.msk.bf16.gmra.mxu0 %vm198_vm1, %v4439_v54 }
  0x63   :  { %968 = vmatprep.mubr.bf16.mxu0 %v5393_v2 }
  0x6a   :  { %3438 = vmatmul.mubr.msk.bf16.gmra.mxu0 %vm198_vm1, %v843_v5 }
  0x6b   :  { %978 = vmatprep.mubr.bf16.mxu0 %v5393_v2 }
  0x72   :  { %3439 = vmatmul.mubr.msk.bf16.gmra.mxu0 %vm198_vm1, %v842_v4 }
  0x73   :  { %20 = vsyncpa [#allocation3], 0  ;;  %v4017_v22 = vld [vmem:[%s5381_s4 + $0x38] sm:$0xff]   ;;  %v4019_v27 = vld [vmem:[%s5381_s4 + $0x30] sm:$0xff]   ;;  %v1007_v51 = vlaneseq  ;;  %vm1071_vm5 = vcmask 490496   ;;  %vm1315_vm6 = vcmask 1043456  }
  0x74   :  { %1320 = vmatpush1.bf16.msra.mxu0 %v4017_v22  ;;  %v4021_v33 = vld [vmem:[%s5381_s4 + $0x28] sm:$0xff]   ;;  %v4023_v38 = vld [vmem:[%s5381_s4 + $0x20] sm:$0xff]   ;;  %vm1611_vm7 = vcmask 1041408   ;;  %vm1308_vm8 = vcmask 326656   ;;  %vm1604_vm9 = vcmask 687104   ;;  %vm2267_vm10 = vcmask 1044480  }
  0x75   :  { %1321 = vmatprep.subr.bf16.mxu0 %v5393_v2  ;;  %vm2263_vm11 = vcmask 211968   ;;  %vm2457_vm12 = vcmask 1042432   ;;  %vm2453_vm13 = vcmask 179200   ;;  %vm4210_vm14 = vmmov 0   ;;  %s4211_s30 = smov [#allocation2]  }
  0x76   :  { %vm2678_vm15 = vcmask 613376  }
  0x78   :  { %1322 = vmatpush1.bf16.msra.mxu0 %v4019_v27 }
  0x79   :  { %1323 = vmatprep.subr.bf16.mxu0 %v5393_v2 }
  0x7c   :  { %1324 = vmatpush1.bf16.msra.mxu0 %v4021_v33 }
  0x7d   :  { %1325 = vmatprep.subr.bf16.mxu0 %v5393_v2 }
  0x80   :  { %1326 = vmatpush1.bf16.msra.mxu0 %v4023_v38 }
  0x81   :  { %1327 = vmatprep.subr.bf16.mxu0 %v5393_v2 }
  0xda   :  { %v245_v6 = vpop.f32.mrf.mxu0 }
  0xdb   :  { %v390_v7 = vpop.f32.mrf.mxu1 }
  0xdc   :  { %v391_v8 = vadd.f32 %v390_v7, %v245_v6  ;;  %v247_v9 = vpop.f32.mrf.mxu0  ;;  %v4687_v6 = vshrl.u32 %v1007_v51, 7 }
  0xdd   :  { %v392_v10 = vpop.f32.mrf.mxu1 }
  0xde   :  { %v393_v11 = vadd.f32 %v392_v10, %v247_v9  ;;  %v249_v54 = vpop.f32.mrf.mxu0  ;;  %v5395_v10 = vsub.s32 0, %v4687_v6  ;;  %v1013_v27 = vsub.s32 1, %v4687_v6 }
  0xdf   :  { %v394_v12 = vpop.f32.mrf.mxu1 }
  0xe0   :  { %v395_v13 = vadd.f32 %v394_v12, %v249_v54  ;;  %v4613_v14 = vpop.f32.mrf.mxu0 }
  0xe1   :  { %v4615_v32 = vpop.f32.mrf.mxu1 }
  0xe2   :  { %v4617_v48 = vpop.f32.mrf.mxu0 }
  0xe3   :  { %v4619_v15 = vpop.f32.mrf.mxu1 }
  0xe4   :  { %v4621_v16 = vpop.f32.mrf.mxu0 }
  0xe5   :  { %v4623_v17 = vpop.f32.mrf.mxu1 }
  0xe6   :  { %v4625_v18 = vpop.f32.mrf.mxu0  ;;  %v403_v2 = vadd.f32 %v4623_v17, %v4621_v16 }
  0xe7   :  { %v4627_v19 = vpop.f32.mrf.mxu1 }
  0xe8   :  { %v4629_v20 = vpop.f32.mrf.mxu0 }
  0xe9   :  { %v4631_v21 = vpop.f32.mrf.mxu1 }
  0xea   :  { %v4636_v23 = vpop.f32.mrf.mxu0  ;;  %v407_v16 = vadd.f32 %v4631_v21, %v4629_v20 }
  0xeb   :  { %v4638_v25 = vpop.f32.mrf.mxu1 }
  0xec   :  { %v4643_v28 = vpop.f32.mrf.mxu0 }
  0xed   :  { %v4645_v29 = vpop.f32.mrf.mxu1 }
  0xee   :  { %v4648_v30 = vpop.f32.mrf.mxu0  ;;  %v413_v21 = vadd.f32 %v4645_v29, %v4643_v28 }
  0xef   :  { %v4650_v31 = vpop.f32.mrf.mxu1 }
  0xf0   :  { %v4655_v34 = vpop.f32.mrf.mxu0 }
  0xf1   :  { %v4657_v35 = vpop.f32.mrf.mxu1 }
  0xf2   :  { %v4660_v36 = vpop.f32.mrf.mxu0  ;;  %v417_v28 = vadd.f32 %v4657_v35, %v4655_v34 }
  0xf3   :  { %v4662_v37 = vpop.f32.mrf.mxu1 }
  0xf4   :  { %v4667_v40 = vpop.f32.mrf.mxu0 }
  0xf5   :  { %v4669_v41 = vpop.f32.mrf.mxu1 }
  0xf6   :  { %v4672_v39 = vpop.f32.mrf.mxu0 }
  0xf7   :  { %v4674_v42 = vpop.f32.mrf.mxu1 }
  0xf8   :  { %v4676_v44 = vpop.f32.mrf.mxu0 }
  0xf9   :  { %v4678_v43 = vpop.f32.mrf.mxu1 }
  0xfa   :  { %5396 = vst [vmem:[#allocation5_spill] sm:$0xff] %v4678_v43  ;;  %v560_v24 = vpop.f32.mrf.mxu0 }
  0xfb   :  { %v764_v45 = vpop.f32.mrf.mxu1  ;;  %v599_v46 = vadd.f32 %v560_v24, %v391_v8  ;;  %v401_v24 = vadd.f32 %v4619_v15, %v4617_v48 }
  0xfc   :  { %v562_v26 = vpop.f32.mrf.mxu0 }
  0xfd   :  { %v766_v47 = vpop.f32.mrf.mxu1  ;;  %v600_v49 = vadd.f32 %v562_v26, %v393_v11  ;;  %v1005_v11 = vld [vmem:[%s5379_s2] sm:$0x3]  ;;  %v803_v22 = vadd.f32 %v764_v45, %v599_v46 }
  0xfe   :  { %v564_v50 = vpop.f32.mrf.mxu0  ;;  %v4704_v38 = vrot.slane %v1005_v11, %v5395_v10  ;;  %v4712_v46 = vrot.slane %v1005_v11, %v1013_v27  ;;  %v405_v10 = vadd.f32 %v4627_v19, %v4625_v18 }
  0xff   :  { %v601_v52 = vadd.f32 %v564_v50, %v395_v13  ;;  %v768_v55 = vpop.f32.mrf.mxu1  ;;  %v397_v13 = vadd.f32 %v4615_v32, %v4613_v14  ;;  %v804_v26 = vadd.f32 %v766_v47, %v600_v49 }
 0x100   :  { %v566_v53 = vpop.f32.mrf.mxu0 }
 0x101   :  { %v770_v57 = vpop.f32.mrf.mxu1  ;;  %v602_v50 = vadd.f32 %v566_v53, %v397_v13  ;;  %v805_v14 = vadd.f32 %v768_v55, %v601_v52 }
 0x102   :  { %v570_v56 = vpop.f32.mrf.mxu0 }
 0x103   :  { %v774_v60 = vpop.f32.mrf.mxu1  ;;  %v603_v32 = vadd.f32 %v570_v56, %v401_v24  ;;  %v806_v15 = vadd.f32 %v770_v57, %v602_v50 }
 0x104   :  { %v572_v58 = vpop.f32.mrf.mxu0 }
 0x105   :  { %v776_v63 = vpop.f32.mrf.mxu1  ;;  %v604_v43 = vadd.f32 %v572_v58, %v403_v2  ;;  %v807_v55 = vadd.f32 %v774_v60, %v603_v32  ;;  %v411_v2 = vadd.f32 %v4638_v25, %v4636_v23  ;;  %v415_v25 = vadd.f32 %v4650_v31, %v4648_v30 }
 0x106   :  { %v574_v59 = vpop.f32.mrf.mxu0 }
 0x107   :  { %v778_v3 = vpop.f32.mrf.mxu1  ;;  %v605_v17 = vadd.f32 %v574_v59, %v405_v10  ;;  %v808_v18 = vadd.f32 %v776_v63, %v604_v43 }
 0x108   :  { %v576_v61 = vpop.f32.mrf.mxu0 }
 0x109   :  { %v780_v7 = vpop.f32.mrf.mxu1  ;;  %v606_v19 = vadd.f32 %v576_v61, %v407_v16  ;;  %v809_v59 = vadd.f32 %v778_v3, %v605_v17 }
 0x10a   :  { %v580_v62 = vpop.f32.mrf.mxu0 }
 0x10b   :  { %v784_v54 = vpop.f32.mrf.mxu1  ;;  %v607_v60 = vadd.f32 %v580_v62, %v411_v2  ;;  %v810_v63 = vadd.f32 %v780_v7, %v606_v19 }
 0x10c   :  { %v582_v0 = vpop.f32.mrf.mxu0 }
 0x10d   :  { %v608_v43 = vadd.f32 %v582_v0, %v413_v21  ;;  %v421_v0 = vadd.f32 %v4662_v37, %v4660_v36 }
 0x10e   :  { %v4681_v1 = vpop.f32.mrf.mxu0 }
 0x10f   :  { %v609_v29 = vadd.f32 %v4681_v1, %v415_v25  ;;  %v423_v1 = vadd.f32 %v4669_v41, %v4667_v40 }
 0x110   :  { %v4683_v4 = vpop.f32.mrf.mxu0 }
 0x112   :  { %v4685_v5 = vpop.f32.mrf.mxu0 }
 0x113   :  { %v611_v17 = vadd.f32 %v4685_v5, %v421_v0  ;;  %v5399_v5 = vld [vmem:[#allocation5_spill] sm:$0xff] }
 0x114   :  { %v4689_v8 = vpop.f32.mrf.mxu0 }
 0x116   :  { %v4691_v9 = vpop.f32.mrf.mxu0 }
 0x117   :  { %5397 = vst [vmem:[#allocation6_spill] sm:$0xff] %v4691_v9 }
 0x118   :  { %v4697_v12 = vpop.f32.mrf.mxu0 }
 0x119   :  { %5398 = vst [vmem:[#allocation7_spill] sm:$0xff] %v4697_v12  ;;  %v786_v12 = vpop.f32.mrf.mxu1 }
 0x11a   :  { %v950_v33 = vpop.f32.mrf.mxu0  ;;  %v812_v7 = vadd.f32 %v786_v12, %v608_v43  ;;  %v612_v12 = vadd.f32 %v4689_v8, %v423_v1  ;;  %v4014_v1 = vld [vmem:[%s5380_s3 + $0x8] sm:$0xff]  }
 0x11b   :  { %v989_v51 = vadd.f32 %v950_v33, %v803_v22  ;;  %v788_v52 = vpop.f32.mrf.mxu1 }
 0x11c   :  { %v952_v9 = vpop.f32.mrf.mxu0 }
 0x11d   :  { %v990_v45 = vadd.f32 %v952_v9, %v804_v26  ;;  %v1017_v47 = vadd.f32 %v4704_v38, %v989_v51  ;;  %v790_v10 = vpop.f32.mrf.mxu1 }
 0x11e   :  { %v954_v48 = vpop.f32.mrf.mxu0  ;;  %v5400_v19 = vld [vmem:[#allocation6_spill] sm:$0xff] }
 0x11f   :  { %v991_v49 = vadd.f32 %v954_v48, %v805_v14  ;;  %v1018_v56 = vadd.f32 %v4712_v46, %v990_v45  ;;  %v1033_v58 = vmax.f32 %v1017_v47, 0.0  ;;  %v794_v62 = vpop.f32.mrf.mxu1  ;;  %v811_v45 = vadd.f32 %v784_v54, %v607_v60 }
 0x120   :  { %v956_v53 = vpop.f32.mrf.mxu0  ;;  %v813_v54 = vadd.f32 %v788_v52, %v609_v29  ;;  %v427_v52 = vadd.f32 %v5399_v5, %v4676_v44  ;;  %v5401_v21 = vld [vmem:[#allocation7_spill] sm:$0xff] }
 0x121   :  { %v1019_v9 = vadd.f32 %v4704_v38, %v991_v49  ;;  %v992_v11 = vadd.f32 %v956_v53, %v806_v15  ;;  %v1034_v24 = vmax.f32 %v1018_v56, 0.0  ;;  %v610_v15 = vadd.f32 %v4683_v4, %v417_v28  ;;  %v796_v53 = vpop.f32.mrf.mxu1 }
 0x122   :  { %v960_v57 = vpop.f32.mrf.mxu0  ;;  %v425_v4 = vadd.f32 %v4674_v42, %v4672_v39  ;;  %v816_v8 = vadd.f32 %v796_v53, %v612_v12  ;;  %v4022_v53 = vld [vmem:[%s5381_s4 + $0x7c] sm:$0xff]  }
 0x123   :  { %v1035_v13 = vmax.f32 %v1019_v9, 0.0  ;;  %v1020_v22 = vadd.f32 %v4712_v46, %v992_v11  ;;  %v993_v20 = vadd.f32 %v960_v57, %v807_v55  ;;  %v814_v2 = vadd.f32 %v790_v10, %v610_v15  ;;  %v4030_v12 = vld [vmem:[%s5381_s4 + $0x5c] sm:$0xff]  }
 0x124   :  { %v962_v33 = vpop.f32.mrf.mxu0  ;;  %v613_v57 = vadd.f32 %v5400_v19, %v425_v4  ;;  %v4029_v4 = vld [vmem:[%s5381_s4 + $0x8] sm:$0xff]   ;;  %v4036_v19 = vld [vmem:[%s5381_s4 + $0x9c] sm:$0xff]  }
 0x125   :  { %v4726_v26 = vpack.c.bf16 %v1035_v13, %v1033_v58  ;;  %v1036_v50 = vmax.f32 %v1020_v22, 0.0  ;;  %v994_v23 = vadd.f32 %v962_v33, %v808_v18  ;;  %v1021_v51 = vadd.f32 %v4704_v38, %v993_v20  ;;  %v798_v58 = vpop.f32.mrf.mxu1 }
 0x126   :  { %v964_v61 = vpop.f32.mrf.mxu0  ;;  %v815_v22 = vadd.f32 %v794_v62, %v611_v17  ;;  %v817_v44 = vadd.f32 %v798_v58, %v613_v57  ;;  %v4018_v17 = vld [vmem:[%s5381_s4 + $0x8c] sm:$0xff]   ;;  %v4037_v57 = vld [vmem:[%s5381_s4 + $0x40] sm:$0xff]   ;;  %v4038_v58 = vld [vmem:[%s5381_s4 + $0x94] sm:$0xff]  }
 0x127   :  { %v995_v14 = vadd.f32 %v964_v61, %v809_v59  ;;  %v4731_v32 = vpack.c.bf16 %v1036_v50, %v1034_v24  ;;  %v1022_v48 = vadd.f32 %v4712_v46, %v994_v23  ;;  %v1037_v49 = vmax.f32 %v1021_v51, 0.0  ;;  %v800_v23 = vpop.f32.mrf.mxu1 }
 0x128   :  { %v966_v3 = vpop.f32.mrf.mxu0  ;;  %v614_v59 = vadd.f32 %v5401_v21, %v427_v52  ;;  %v4035_v52 = vld [vmem:[%s5381_s4 + $0x48] sm:$0xff]  }
 0x129   :  { %v1023_v30 = vadd.f32 %v4704_v38, %v995_v14  ;;  %v996_v31 = vadd.f32 %v966_v3, %v810_v63  ;;  %v1038_v56 = vmax.f32 %v1022_v48, 0.0 }
 0x12a   :  { %v970_v47 = vpop.f32.mrf.mxu0  ;;  %v818_v28 = vadd.f32 %v800_v23, %v614_v59 }
 0x12b   :  { %v1039_v16 = vmax.f32 %v1023_v30, 0.0  ;;  %v1024_v34 = vadd.f32 %v4712_v46, %v996_v31  ;;  %v997_v35 = vadd.f32 %v970_v47, %v811_v45 }
 0x12c   :  { %v972_v55 = vpop.f32.mrf.mxu0 }
 0x12d   :  { %v4745_v9 = vpack.c.bf16 %v1039_v16, %v1037_v49  ;;  %v1040_v36 = vmax.f32 %v1024_v34, 0.0  ;;  %v998_v37 = vadd.f32 %v972_v55, %v812_v7  ;;  %v1025_v18 = vadd.f32 %v4704_v38, %v997_v35  ;;  %v4024_v55 = vld [vmem:[%s5381_s4 + $0x74] sm:$0xff]  }
 0x12e   :  { %v974_v11 = vpop.f32.mrf.mxu0 }
 0x12f   :  { %v999_v40 = vadd.f32 %v974_v11, %v813_v54  ;;  %v1052_v41 = vpack.c.bf16 %v1040_v36, %v1038_v56  ;;  %v1026_v20 = vadd.f32 %v4712_v46, %v998_v37  ;;  %v1041_v10 = vmax.f32 %v1025_v18, 0.0  ;;  %v4015_v54 = vld [vmem:[%s5380_s3 + $0x10] sm:$0xff]   ;;  %v4025_v56 = vld [vmem:[%s5381_s4 + $0x18] sm:$0xff]   ;;  %v4028_v37 = vld [vmem:[%s5381_s4 + $0x64] sm:$0xff]  }
 0x130   :  { %v976_v13 = vpop.f32.mrf.mxu0  ;;  %1328 = vmatpush1.bf16.msra.mxu0 %v4025_v56  ;;  %v4027_v36 = vld [vmem:[%s5381_s4 + $0x10] sm:$0xff]   ;;  %v4031_v11 = vld [vmem:[%s5381_s4] sm:$0xff]  }
 0x131   :  { %v1027_v39 = vadd.f32 %v4704_v38, %v999_v40  ;;  %v1000_v42 = vadd.f32 %v976_v13, %v814_v2  ;;  %v1042_v43 = vmax.f32 %v1026_v20, 0.0  ;;  %v4032_v2 = vld [vmem:[%s5381_s4 + $0x54] sm:$0xff]   ;;  %v4033_v18 = vld [vmem:[%s5381_s4 + $0x50] ss:$0 sps:$4 sm:$0xff]   ;;  %v4034_v40 = vld [vmem:[%s5381_s4 + $0xa4] ss:$0 sps:$4 sm:$0xff]  }
 0x132   :  { %v980_v60 = vpop.f32.mrf.mxu0  ;;  %v1454_v5 = vsel %vm1315_vm6, %v4034_v40, 0  ;;  %v1521_v13 = vld [vmem:[%s5382_s5 + $0x50] sm:$0x33]  ;;  %v3511_v20 = vld [vmem:[%s5382_s5 + $0xa8] sm:$0x33] }
 0x133   :  { %v1043_v33 = vmax.f32 %v1027_v39, 0.0  ;;  %v1028_v24 = vadd.f32 %v4712_v46, %v1000_v42  ;;  %v1001_v50 = vadd.f32 %v980_v60, %v815_v22  ;;  %v3538_v22 = vcombine.high %v1521_v13, %v1521_v13  ;;  %v4055_v56 = vld [vmem:[%s5382_s5 + $0x98] ss:$8 sps:$4 sm:$0xff]   ;;  %v4074_v40 = vld [vmem:[%s5382_s5 + $0x6c] ss:$8 sps:$4 sm:$0xff]  }
 0x134   :  { %v982_v25 = vpop.f32.mrf.mxu0  ;;  %v3523_v39 = vcombine.high %v3511_v20, %v3511_v20 }
 0x135   :  { %v1053_v61 = vpack.c.bf16 %v1043_v33, %v1041_v10  ;;  %v1044_v63 = vmax.f32 %v1028_v24, 0.0  ;;  %v1002_v51 = vadd.f32 %v982_v25, %v816_v8  ;;  %v1029_v29 = vadd.f32 %v4704_v38, %v1001_v50 }
 0x136   :  { %v984_v14 = vpop.f32.mrf.mxu0 }
 0x137   :  { %v1003_v62 = vadd.f32 %v984_v14, %v817_v44  ;;  %v1054_v3 = vpack.c.bf16 %v1044_v63, %v1042_v43  ;;  %v1030_v48 = vadd.f32 %v4712_v46, %v1002_v51  ;;  %v1045_v0 = vmax.f32 %v1029_v29, 0.0 }
 0x138   :  { %v986_v45 = vpop.f32.mrf.mxu0  ;;  %v3522_v63 = vcombine.low %v3511_v20, %v3511_v20 }
 0x139   :  { %v1031_v30 = vadd.f32 %v4704_v38, %v1003_v62  ;;  %v1004_v31 = vadd.f32 %v986_v45, %v818_v28  ;;  %v1046_v47 = vmax.f32 %v1030_v48, 0.0  ;;  %v4013_v38 = vld [vmem:[%s5380_s3] sm:$0xff]  }
 0x13b   :  { %v1047_v7 = vmax.f32 %v1031_v30, 0.0  ;;  %v1032_v15 = vadd.f32 %v4712_v46, %v1004_v31  ;;  %v5402_v46 = vmov 0   ;;  %v4043_v30 = vld [vmem:[%s5382_s5 + $0x44] ss:$8 sps:$4 sm:$0xff]   ;;  %v1613_v31 = vsel %vm1611_vm7, %v3522_v63, 0 }
 0x13c   :  { %1329 = vmatprep.subr.bf16.mxu0 %v5402_v46 }
 0x13d   :  { %v1055_v49 = vpack.c.bf16 %v1047_v7, %v1045_v0  ;;  %v1048_v16 = vmax.f32 %v1032_v15, 0.0  ;;  %1330 = vmatpush1.bf16.msra.mxu0 %v4027_v36  ;;  %v4041_v7 = vld [vmem:[%s5382_s5 + $0x40] ss:$8 sps:$4 sm:$0xff]  }
 0x13e   :  { %1331 = vmatprep.subr.bf16.mxu0 %v5402_v46  ;;  %v4058_v36 = vld [vmem:[%s5382_s5] ss:$8 sps:$4 sm:$0xff]  }
 0x13f   :  { %v1056_v34 = vpack.c.bf16 %v1048_v16, %v1046_v47  ;;  %v1080_v35 = vsel %vm836_vm2, %v1055_v49, 0  ;;  %v4046_v49 = vld [vmem:[%s5382_s5 + $0x34] ss:$8 sps:$4 sm:$0xff]  }
 0x141   :  { %3442 = vmatprep.subr.msk.bf16.mxu1 %vm836_vm2, %v1056_v34  ;;  %1332 = vmatpush1.bf16.msra.mxu0 %v4029_v4  ;;  %v4061_v4 = vld [vmem:[%s5382_s5 + $0x88] ss:$8 sps:$4 sm:$0xff]  }
 0x142   :  { %1094 = vmatpush1.bf16.msra.mxu1 %v1080_v35  ;;  %1333 = vmatprep.subr.bf16.mxu0 %v5402_v46 }
 0x143   :  { %1095 = vmatprep.subr.bf16.mxu1 %v1054_v3 }
 0x145   :  { %1334 = vmatpush1.bf16.msra.mxu0 %v4031_v11 }
 0x146   :  { %1096 = vmatpush1.bf16.msra.mxu1 %v1053_v61  ;;  %1345 = vmatprep.subr.bf16.mxu0 %v5402_v46 }
 0x147   :  { %1097 = vmatprep.subr.bf16.mxu1 %v1052_v41 }
 0x14a   :  { %1098 = vmatpush1.bf16.msra.mxu1 %v4745_v9 }
 0x14b   :  { %1099 = vmatprep.subr.bf16.mxu1 %v4731_v32 }
 0x14e   :  { %1100 = vmatpush1.bf16.msra.mxu1 %v4726_v26 }
 0x14f   :  { %3451 = vmatprep.subr.msk.bf16.mxu1 %vm836_vm2, %v1056_v34 }
 0x151   :  { %3443 = vmatmul.mubr.msk.bf16.vlgmr.msra.gmra.mxu1 %vm1071_vm5, %v4013_v38 }
 0x152   :  { %1168 = vmatpush1.bf16.msra.mxu1 %v1080_v35  ;;  %1127 = vmatprep.mubr.bf16.mxu1 %v5402_v46 }
 0x153   :  { %1169 = vmatprep.subr.bf16.mxu1 %v1054_v3 }
 0x156   :  { %1170 = vmatpush1.bf16.msra.mxu1 %v1053_v61  ;;  %v3537_v61 = vcombine.low %v1521_v13, %v1521_v13 }
 0x157   :  { %1171 = vmatprep.subr.bf16.mxu1 %v1052_v41  ;;  %v1317_v41 = vsel %vm1315_vm6, %v4033_v18, 0  ;;  %v4065_v18 = vld [vmem:[%s5382_s5 + $0x78] ss:$8 sps:$4 sm:$0xff]  }
 0x158   :  { %1346 = vmatpush2.bf16.msra.mxu0 %v1317_v41  ;;  %v1731_v48 = vsel %vm1611_vm7, %v3537_v61, 0  ;;  %v4072_v41 = vld [vmem:[%s5382_s5 + $0x68] ss:$8 sps:$4 sm:$0xff]  }
 0x159   :  { %3444 = vmatmul.mubr.msk.bf16.gmra.mxu1 %vm1071_vm5, %v4014_v1  ;;  %1347 = vmatprep.subr.bf16.mxu0 %v5402_v46  ;;  %v4044_v1 = vld [vmem:[%s5382_s5 + $0x30] ss:$8 sps:$4 sm:$0xff]  }
 0x15a   :  { %1172 = vmatpush1.bf16.msra.mxu1 %v4745_v9  ;;  %1191 = vmatprep.mubr.bf16.mxu1 %v5402_v46  ;;  %v4026_v9 = vld [vmem:[%s5381_s4 + $0x6c] sm:$0xff]  }
 0x15b   :  { %1173 = vmatprep.subr.bf16.mxu1 %v4731_v32  ;;  %v4020_v32 = vld [vmem:[%s5381_s4 + $0x84] sm:$0xff]  }
 0x15c   :  { %1348 = vmatpush2.bf16.msra.mxu0 %v4035_v52  ;;  %v4080_v52 = vld [vmem:[%s5382_s5 + $0x5c] ss:$8 sps:$4 sm:$0xff]   ;;  %v4069_v61 = vld [vmem:[%s5382_s5 + $0x148] ss:$8 sps:$4 sm:$0xff]  }
 0x15d   :  { %1349 = vmatprep.subr.bf16.mxu0 %v5402_v46 }
 0x15e   :  { %1174 = vmatpush1.bf16.msra.mxu1 %v4726_v26  ;;  %v4016_v26 = vld [vmem:[%s5380_s3 + $0x18] sm:$0xff]  }
 0x15f   :  { %1456 = vmatprep.subr.bf16.mxu1 %v5402_v46 }
 0x160   :  { %1350 = vmatpush2.bf16.msra.mxu0 %v4037_v57 }
 0x161   :  { %3452 = vmatmul.mubr.msk.bf16.vlgmr.msra.gmra.mxu1 %vm1071_vm5, %v4015_v54  ;;  %3524 = vmatprep.subr.msk.bf16.mxu0 %vm1611_vm7, %v3523_v39 }
 0x162   :  { %1201 = vmatprep.mubr.bf16.mxu1 %v5402_v46  ;;  %1457 = vmatpush1.bf16.msra.mxu1 %v4018_v17  ;;  %v4049_v17 = vld [vmem:[%s5382_s5 + $0x24] ss:$8 sps:$4 sm:$0xff]  }
 0x163   :  { %1458 = vmatprep.subr.bf16.mxu1 %v5402_v46 }
 0x166   :  { %1459 = vmatpush1.bf16.msra.mxu1 %v4020_v32  ;;  %v4047_v32 = vld [vmem:[%s5382_s5 + $0x20] ss:$8 sps:$4 sm:$0xff]  }
 0x167   :  { %1460 = vmatprep.subr.bf16.mxu1 %v5402_v46 }
 0x169   :  { %3453 = vmatmul.mubr.msk.bf16.gmra.mxu1 %vm1071_vm5, %v4016_v26  ;;  %v4054_v26 = vld [vmem:[%s5382_s5 + $0x14] ss:$8 sps:$4 sm:$0xff]  }
 0x16a   :  { %1461 = vmatpush1.bf16.msra.mxu1 %v4022_v53  ;;  %v4052_v53 = vld [vmem:[%s5382_s5 + $0x10] ss:$8 sps:$4 sm:$0xff]  }
 0x16b   :  { %1462 = vmatprep.subr.bf16.mxu1 %v5402_v46 }
 0x16e   :  { %1463 = vmatpush1.bf16.msra.mxu1 %v4024_v55  ;;  %v4057_v55 = vld [vmem:[%s5382_s5 + $0x9c] ss:$8 sps:$4 sm:$0xff]  }
 0x16f   :  { %1464 = vmatprep.subr.bf16.mxu1 %v5402_v46 }
 0x172   :  { %1465 = vmatpush1.bf16.msra.mxu1 %v4026_v9  ;;  %v4060_v9 = vld [vmem:[%s5382_s5 + $0x4] ss:$8 sps:$4 sm:$0xff]  }
 0x173   :  { %1466 = vmatprep.subr.bf16.mxu1 %v5402_v46 }
 0x176   :  { %1467 = vmatpush1.bf16.msra.mxu1 %v4028_v37  ;;  %v4063_v37 = vld [vmem:[%s5382_s5 + $0x8c] ss:$8 sps:$4 sm:$0xff]  }
 0x177   :  { %1468 = vmatprep.subr.bf16.mxu1 %v5402_v46 }
 0x17a   :  { %1469 = vmatpush1.bf16.msra.mxu1 %v4030_v12  ;;  %v3578_v12 = vld [vmem:[%s5382_s5 + $0x158] sm:$0x33] }
 0x17b   :  { %1470 = vmatprep.subr.bf16.mxu1 %v5402_v46  ;;  %v3590_v11 = vcombine.high %v3578_v12, %v3578_v12  ;;  %v3589_v39 = vcombine.low %v3578_v12, %v3578_v12  ;;  %v4095_v12 = vld [vmem:[%s5382_s5 + $0xe0] ss:$8 sps:$4 sm:$0xff]  }
 0x17e   :  { %1471 = vmatpush1.bf16.msra.mxu1 %v4032_v2  ;;  %v4067_v2 = vld [vmem:[%s5382_s5 + $0x7c] ss:$8 sps:$4 sm:$0xff]  }
 0x17f   :  { %1482 = vmatprep.subr.bf16.mxu1 %v5402_v46 }
 0x182   :  { %1483 = vmatpush2.bf16.msra.mxu1 %v1454_v5  ;;  %v4078_v5 = vld [vmem:[%s5382_s5 + $0x58] ss:$8 sps:$4 sm:$0xff]  }
 0x183   :  { %1484 = vmatprep.subr.bf16.mxu1 %v5402_v46 }
 0x186   :  { %1485 = vmatpush2.bf16.msra.mxu1 %v4036_v19  ;;  %v3552_v19 = vld [vmem:[%s5382_s5 + $0x100] sm:$0x33] }
 0x187   :  { %1486 = vmatprep.subr.bf16.mxu1 %v5402_v46  ;;  %v3564_v57 = vcombine.high %v3552_v19, %v3552_v19 }
 0x18a   :  { %1487 = vmatpush2.bf16.msra.mxu1 %v4038_v58 }
 0x18b   :  { %3539 = vmatprep.subr.msk.bf16.mxu1 %vm1611_vm7, %v3538_v22 }
 0x211   :  { %v1119_v42 = vpop.f32.mrf.mxu1 }
 0x213   :  { %v1121_v8 = vpop.f32.mrf.mxu1 }
 0x215   :  { %v1123_v21 = vpop.f32.mrf.mxu1 }
 0x217   :  { %v1125_v59 = vpop.f32.mrf.mxu1 }
 0x219   :  { %v1129_v60 = vpop.f32.mrf.mxu1 }
 0x21b   :  { %v1131_v10 = vpop.f32.mrf.mxu1 }
 0x21d   :  { %v1133_v33 = vpop.f32.mrf.mxu1 }
 0x21f   :  { %v1135_v24 = vpop.f32.mrf.mxu1 }
 0x221   :  { %v1193_v50 = vpop.f32.mrf.mxu1 }
 0x222   :  { %v1212_v28 = vmax.f32 %v1119_v42, %v1193_v50  ;;  %v4071_v50 = vld [vmem:[%s5382_s5 + $0x14c] ss:$8 sps:$4 sm:$0xff]  }
 0x223   :  { %v1195_v44 = vpop.f32.mrf.mxu1 }
 0x224   :  { %v1213_v51 = vmax.f32 %v1121_v8, %v1195_v44 }
 0x225   :  { %v1197_v23 = vpop.f32.mrf.mxu1 }
 0x226   :  { %v1214_v25 = vmax.f32 %v1123_v21, %v1197_v23 }
 0x227   :  { %v1199_v43 = vpop.f32.mrf.mxu1 }
 0x228   :  { %v1215_v14 = vmax.f32 %v1125_v59, %v1199_v43  ;;  %v1220_v3 = vpack.c.bf16 %v1214_v25, %v1212_v28 }
 0x229   :  { %v1203_v29 = vpop.f32.mrf.mxu1 }
 0x22a   :  { %v1221_v62 = vpack.c.bf16 %v1215_v14, %v1213_v51  ;;  %v1216_v35 = vmax.f32 %v1129_v60, %v1203_v29  ;;  %v4077_v51 = vld [vmem:[%s5382_s5 + $0x13c] ss:$8 sps:$4 sm:$0xff]  }
 0x22b   :  { %v1205_v45 = vpop.f32.mrf.mxu1 }
 0x22c   :  { %3465 = vmatprep.mubr.msk.bf16.mxu0 %vm1308_vm8, %v1221_v62  ;;  %3499 = vmatprep.mubr.msk.bf16.mxu1 %vm1308_vm8, %v1221_v62  ;;  %v1217_v16 = vmax.f32 %v1131_v10, %v1205_v45 }
 0x22d   :  { %v1207_v0 = vpop.f32.mrf.mxu1  ;;  %1352 = vmatmul.mubr.bf16.vlgmr.msra.gmra.mxu0 %v1220_v3  ;;  %1489 = vmatmul.mubr.bf16.vlgmr.msra.gmra.mxu1 %v1220_v3 }
 0x22e   :  { %1741 = vmatpush1.bf16.msra.mxu1 %v1731_v48  ;;  %1623 = vmatpush1.bf16.msra.mxu0 %v1613_v31  ;;  %v1218_v15 = vmax.f32 %v1133_v33, %v1207_v0  ;;  %v4075_v48 = vld [vmem:[%s5382_s5 + $0x138] ss:$8 sps:$4 sm:$0xff]   ;;  %v4083_v31 = vld [vmem:[%s5382_s5 + $0x12c] ss:$8 sps:$4 sm:$0xff]  }
 0x22f   :  { %v1209_v47 = vpop.f32.mrf.mxu1  ;;  %1742 = vmatprep.subr.bf16.mxu1 %v4043_v30  ;;  %1624 = vmatprep.subr.bf16.mxu0 %v4057_v55  ;;  %v4097_v55 = vld [vmem:[%s5382_s5 + $0xe4] ss:$8 sps:$4 sm:$0xff]  }
 0x230   :  { %v1219_v34 = vmax.f32 %v1135_v24, %v1209_v47  ;;  %v1222_v54 = vpack.c.bf16 %v1218_v15, %v1216_v35  ;;  %v2015_v24 = vsel %vm1611_vm7, %v3589_v39, 0  ;;  %v4088_v35 = vld [vmem:[%s5382_s5 + $0x11c] ss:$8 sps:$4 sm:$0xff]  }
 0x232   :  { %v1223_v38 = vpack.c.bf16 %v1219_v34, %v1217_v16  ;;  %1743 = vmatpush1.bf16.msra.mxu1 %v4041_v7  ;;  %1625 = vmatpush1.bf16.msra.mxu0 %v4055_v56  ;;  %v3563_v7 = vcombine.low %v3552_v19, %v3552_v19  ;;  %v4101_v19 = vld [vmem:[%s5382_s5 + $0xc0] ss:$8 sps:$4 sm:$0xff]  }
 0x233   :  { %1744 = vmatprep.subr.bf16.mxu1 %v4046_v49  ;;  %1626 = vmatprep.subr.bf16.mxu0 %v4063_v37  ;;  %v4081_v49 = vld [vmem:[%s5382_s5 + $0x128] ss:$8 sps:$4 sm:$0xff]  }
 0x234   :  { %3466 = vmatprep.mubr.msk.bf16.mxu0 %vm1308_vm8, %v1223_v38  ;;  %3500 = vmatprep.mubr.msk.bf16.mxu1 %vm1308_vm8, %v1223_v38  ;;  %v1868_v38 = vsel %vm1611_vm7, %v3563_v7, 0 }
 0x235   :  { %1360 = vmatmul.mubr.bf16.gmra.mxu0 %v1222_v54  ;;  %1497 = vmatmul.mubr.bf16.gmra.mxu1 %v1222_v54 }
 0x236   :  { %1745 = vmatpush1.bf16.msra.mxu1 %v4044_v1  ;;  %1768 = vmatprep.mubr.bf16.mxu1 %v5402_v46  ;;  %v4091_v1 = vld [vmem:[%s5382_s5 + $0xf4] ss:$8 sps:$4 sm:$0xff]  }
 0x237   :  { %1746 = vmatprep.subr.bf16.mxu1 %v4049_v17  ;;  %1650 = vmatprep.mubr.bf16.mxu0 %v5402_v46 }
 0x238   :  { %1627 = vmatpush1.bf16.msra.mxu0 %v4061_v4 }
 0x239   :  { %1628 = vmatprep.subr.bf16.mxu0 %v4067_v2 }
 0x23a   :  { %1747 = vmatpush1.bf16.msra.mxu1 %v4047_v32  ;;  %v4086_v32 = vld [vmem:[%s5382_s5 + $0x118] ss:$8 sps:$4 sm:$0xff]  }
 0x23b   :  { %1748 = vmatprep.subr.bf16.mxu1 %v4054_v26  ;;  %v4089_v26 = vld [vmem:[%s5382_s5 + $0xf0] ss:$8 sps:$4 sm:$0xff]  }
 0x23c   :  { %1629 = vmatpush1.bf16.msra.mxu0 %v4065_v18  ;;  %v4100_v18 = vld [vmem:[%s5382_s5 + $0xd4] ss:$8 sps:$4 sm:$0xff]  }
 0x23d   :  { %1630 = vmatprep.subr.bf16.mxu0 %v4074_v40 }
 0x23e   :  { %1749 = vmatpush1.bf16.msra.mxu1 %v4052_v53  ;;  %v4094_v53 = vld [vmem:[%s5382_s5 + $0x10c] ss:$8 sps:$4 sm:$0xff]  }
 0x23f   :  { %1750 = vmatprep.subr.bf16.mxu1 %v4060_v9 }
 0x240   :  { %1631 = vmatpush1.bf16.msra.mxu0 %v4072_v41  ;;  %v4098_v41 = vld [vmem:[%s5382_s5 + $0xd0] ss:$8 sps:$4 sm:$0xff]  }
 0x241   :  { %1632 = vmatprep.subr.bf16.mxu0 %v4080_v52  ;;  %v4103_v52 = vld [vmem:[%s5382_s5 + $0xc4] ss:$8 sps:$4 sm:$0xff]  }
 0x242   :  { %1751 = vmatpush1.bf16.msra.mxu1 %v4058_v36  ;;  %v4092_v36 = vld [vmem:[%s5382_s5 + $0x108] ss:$8 sps:$4 sm:$0xff]  }
 0x243   :  { %3591 = vmatprep.subr.msk.bf16.mxu1 %vm1611_vm7, %v3590_v11 }
 0x244   :  { %1633 = vmatpush1.bf16.msra.mxu0 %v4078_v5 }
 0x245   :  { %3565 = vmatprep.subr.msk.bf16.mxu0 %vm1611_vm7, %v3564_v57  ;;  %v4106_v57 = vld [vmem:[%s5382_s5 + $0xb4] ss:$8 sps:$4 sm:$0xff]  }
 0x2ed   :  { %v1353_v58 = vpop.f32.mrf.mxu0  ;;  %v1490_v13 = vpop.f32.mrf.mxu1 }
 0x2ee   :  { %v1505_v21 = vmax.f32 %v1353_v58, %v1490_v13  ;;  %v3604_v58 = vld [vmem:[%s5382_s5 + $0x1b0] sm:$0x33] }
 0x2ef   :  { %v1355_v22 = vpop.f32.mrf.mxu0  ;;  %v1492_v20 = vpop.f32.mrf.mxu1  ;;  %v4104_v13 = vld [vmem:[%s5382_s5 + $0xb0] ss:$8 sps:$4 sm:$0xff]  }
 0x2f0   :  { %v3616_v22 = vcombine.high %v3604_v58, %v3604_v58  ;;  %v3615_v20 = vcombine.low %v3604_v58, %v3604_v58 }
 0x2f1   :  { %v1356_v42 = vpop.f32.mrf.mxu0  ;;  %v1493_v8 = vpop.f32.mrf.mxu1 }
 0x2f2   :  { %v1506_v59 = vmax.f32 %v1356_v42, %v1493_v8  ;;  %v2158_v8 = vsel %vm1611_vm7, %v3615_v20, 0 }
 0x2f3   :  { %v1358_v60 = vpop.f32.mrf.mxu0  ;;  %v1495_v10 = vpop.f32.mrf.mxu1 }
 0x2f4   :  { %v4947_v33 = vpack.c.bf16 %v1506_v59, %v1505_v21  ;;  %v4111_v21 = vld [vmem:[%s5382_s5 + $0x1a4] ss:$8 sps:$4 sm:$0xff]   ;;  %v4109_v60 = vld [vmem:[%s5382_s5 + $0x1a0] ss:$8 sps:$4 sm:$0xff]   ;;  %v4114_v10 = vld [vmem:[%s5382_s5 + $0x194] ss:$8 sps:$4 sm:$0xff]  }
 0x2f5   :  { %v1361_v44 = vpop.f32.mrf.mxu0  ;;  %v1498_v23 = vpop.f32.mrf.mxu1 }
 0x2f6   :  { %3540 = vmatmul.mubr.msk.bf16.vlgmr.msra.gmra.mxu1 %vm1604_vm9, %v4947_v33  ;;  %v1537_v63 = vshll.u32 %v4947_v33, 16  ;;  %v1507_v29 = vmax.f32 %v1361_v44, %v1498_v23  ;;  %v1535_v15 = vshrl.u32 %v4947_v33, 16  ;;  %v1803_v42 = vrot.slane %v4947_v33, 1  ;;  %v4115_v44 = vld [vmem:[%s5382_s5 + $0x180] ss:$8 sps:$4 sm:$0xff]  }
 0x2f7   :  { %2025 = vmatpush1.bf16.msra.mxu1 %v2015_v24  ;;  %v1363_v25 = vpop.f32.mrf.mxu0  ;;  %v1500_v43 = vpop.f32.mrf.mxu1  ;;  %1778 = vmatprep.mubr.bf16.mxu1 %v5402_v46  ;;  %v4112_v24 = vld [vmem:[%s5382_s5 + $0x190] ss:$8 sps:$4 sm:$0xff]   ;;  %v4120_v23 = vld [vmem:[%s5382_s5 + $0x174] ss:$8 sps:$4 sm:$0xff]  }
 0x2f8   :  { %2026 = vmatprep.subr.bf16.mxu1 %v4071_v50  ;;  %v1539_v0 = vrot.slane %v1537_v63, 1  ;;  %v1946_v37 = vrot.slane %v1535_v15, 1  ;;  %v1947_v4 = vrot.slane %v1537_v63, 2  ;;  %v4117_v50 = vld [vmem:[%s5382_s5 + $0x184] ss:$8 sps:$4 sm:$0xff]  }
 0x2f9   :  { %v1364_v14 = vpop.f32.mrf.mxu0  ;;  %v1501_v28 = vpop.f32.mrf.mxu1  ;;  %v4118_v25 = vld [vmem:[%s5382_s5 + $0x170] ss:$8 sps:$4 sm:$0xff]   ;;  %v4123_v43 = vld [vmem:[%s5382_s5 + $0x164] ss:$8 sps:$4 sm:$0xff]  }
 0x2fa   :  { %v1508_v62 = vmax.f32 %v1364_v14, %v1501_v28  ;;  %v1540_v16 = vor.u32 %v1539_v0, %v1535_v15  ;;  %v1948_v40 = vor.u32 %v1947_v4, %v1946_v37 }
 0x2fb   :  { %2027 = vmatpush1.bf16.msra.mxu1 %v4069_v61  ;;  %v1366_v3 = vpop.f32.mrf.mxu0  ;;  %v1503_v45 = vpop.f32.mrf.mxu1  ;;  %v4121_v61 = vld [vmem:[%s5382_s5 + $0x160] ss:$8 sps:$4 sm:$0xff]  }
 0x2fc   :  { %v4966_v30 = vpack.c.bf16 %v1508_v62, %v1507_v29  ;;  %2028 = vmatprep.subr.bf16.mxu1 %v4077_v51  ;;  %v2093_v51 = vrot.slane %v4947_v33, 2 }
 0x2fe   :  { %3541 = vmatmul.mubr.msk.bf16.gmra.mxu1 %vm1604_vm9, %v4966_v30  ;;  %v1542_v47 = vshll.u32 %v4966_v30, 16  ;;  %v1546_v54 = vshrl.u32 %v4966_v30, 16  ;;  %v1804_v39 = vrot.slane %v4966_v30, 1  ;;  %v2094_v63 = vrot.slane %v4966_v30, 2 }
 0x2ff   :  { %2029 = vmatpush1.bf16.msra.mxu1 %v4075_v48  ;;  %2052 = vmatprep.mubr.bf16.mxu1 %v5402_v46 }
 0x300   :  { %2030 = vmatprep.subr.bf16.mxu1 %v4083_v31  ;;  %v1544_v34 = vrot.slane %v1542_v47, 1  ;;  %v1949_v56 = vrot.slane %v1546_v54, 1  ;;  %v1950_v9 = vrot.slane %v1542_v47, 2  ;;  %v1805_v59 = vsel %vm446_vm3, %v1803_v42, %v1804_v39 }
 0x301   :  { %v2095_v14 = vsel %vm836_vm2, %v2093_v51, %v2094_v63 }
 0x302   :  { %v1545_v17 = vsel %vm106_vm0, %v1540_v16, %v1544_v34  ;;  %v1548_v11 = vor.u32 %v1546_v54, %v1544_v34  ;;  %v1951_v2 = vor.u32 %v1950_v9, %v1949_v56  ;;  %vm3143_vm0 = vcmask 982016  }
 0x303   :  { %2031 = vmatpush1.bf16.msra.mxu1 %v4081_v49  ;;  %3525 = vmatmul.mubr.msk.bf16.vlgmr.msra.gmra.mxu0 %vm1604_vm9, %v1545_v17 }
 0x304   :  { %1878 = vmatpush1.bf16.msra.mxu0 %v1868_v38  ;;  %2032 = vmatprep.subr.bf16.mxu1 %v4088_v35  ;;  %v1952_v5 = vsel %vm632_vm4, %v1948_v40, %v1951_v2 }
 0x305   :  { %1879 = vmatprep.subr.bf16.mxu0 %v4091_v1  ;;  %1660 = vmatprep.mubr.bf16.mxu0 %v5402_v46 }
 0x307   :  { %2033 = vmatpush1.bf16.msra.mxu1 %v4086_v32 }
 0x308   :  { %1880 = vmatpush1.bf16.msra.mxu0 %v4089_v26  ;;  %2034 = vmatprep.subr.bf16.mxu1 %v4094_v53 }
 0x309   :  { %1881 = vmatprep.subr.bf16.mxu0 %v4097_v55 }
 0x30b   :  { %2035 = vmatpush1.bf16.msra.mxu1 %v4092_v36  ;;  %3526 = vmatmul.mubr.msk.bf16.gmra.mxu0 %vm1604_vm9, %v1548_v11 }
 0x30c   :  { %1882 = vmatpush1.bf16.msra.mxu0 %v4095_v12  ;;  %1905 = vmatprep.mubr.bf16.mxu0 %v5402_v46 }
 0x30d   :  { %1883 = vmatprep.subr.bf16.mxu0 %v4100_v18 }
 0x30e   :  { %3592 = vmatmul.mubr.msk.bf16.vlgmr.msra.gmra.mxu1 %vm1604_vm9, %v1952_v5 }
 0x30f   :  { %2062 = vmatprep.mubr.bf16.mxu1 %v5402_v46 }
 0x310   :  { %1884 = vmatpush1.bf16.msra.mxu0 %v4098_v41 }
 0x311   :  { %1885 = vmatprep.subr.bf16.mxu0 %v4103_v52 }
 0x314   :  { %1886 = vmatpush1.bf16.msra.mxu0 %v4101_v19 }
 0x315   :  { %1887 = vmatprep.subr.bf16.mxu0 %v4106_v57 }
 0x316   :  { %3593 = vmatmul.mubr.msk.bf16.gmra.mxu1 %vm1604_vm9, %v1951_v2 }
 0x317   :  { %2306 = vmatprep.mubr.bf16.mxu1 %v5402_v46 }
 0x318   :  { %1888 = vmatpush1.bf16.msra.mxu0 %v4104_v13 }
 0x319   :  { %3617 = vmatprep.subr.msk.bf16.mxu0 %vm1611_vm7, %v3616_v22 }
 0x31b   :  { %3566 = vmatmul.mubr.msk.bf16.vlgmr.msra.gmra.mxu0 %vm1604_vm9, %v1805_v59 }
 0x31c   :  { %2168 = vmatpush1.bf16.msra.mxu0 %v2158_v8  ;;  %1915 = vmatprep.mubr.bf16.mxu0 %v5402_v46  ;;  %v2224_v8 = vld [vmem:[%s5383_s6] sm:$0x3] }
 0x31d   :  { %2169 = vmatprep.subr.bf16.mxu0 %v4111_v21 }
 0x320   :  { %2170 = vmatpush1.bf16.msra.mxu0 %v4109_v60 }
 0x321   :  { %2171 = vmatprep.subr.bf16.mxu0 %v4114_v10 }
 0x323   :  { %3567 = vmatmul.mubr.msk.bf16.gmra.mxu0 %vm1604_vm9, %v1804_v39 }
 0x324   :  { %2172 = vmatpush1.bf16.msra.mxu0 %v4112_v24  ;;  %2195 = vmatprep.mubr.bf16.mxu0 %v5402_v46 }
 0x325   :  { %2173 = vmatprep.subr.bf16.mxu0 %v4117_v50 }
 0x328   :  { %2174 = vmatpush1.bf16.msra.mxu0 %v4115_v44 }
 0x329   :  { %2175 = vmatprep.subr.bf16.mxu0 %v4120_v23 }
 0x32c   :  { %2176 = vmatpush1.bf16.msra.mxu0 %v4118_v25 }
 0x32d   :  { %2177 = vmatprep.subr.bf16.mxu0 %v4123_v43 }
 0x330   :  { %2178 = vmatpush1.bf16.msra.mxu0 %v4121_v61  ;;  %v5403_v61 = vsub.s32 0, %v4687_v6 }
 0x333   :  { %3618 = vmatmul.mubr.msk.bf16.vlgmr.msra.gmra.mxu0 %vm1604_vm9, %v2095_v14 }
 0x334   :  { %2205 = vmatprep.mubr.bf16.mxu0 %v5402_v46 }
 0x33b   :  { %3619 = vmatmul.mubr.msk.bf16.gmra.mxu0 %vm1604_vm9, %v2094_v63  ;;  %v2229_v63 = vrot.slane %v2224_v8, %v5403_v61  ;;  %v4145_v61 = vld [vmem:[%s5385_s8 + $0x8c] sm:$0xff]  }
 0x33c   :  { %2360 = vmatprep.mubr.bf16.mxu0 %v5402_v46 }
 0x3b6   :  { %v1770_v29 = vpop.f32.mrf.mxu1 }
 0x3b8   :  { %v1772_v45 = vpop.f32.mrf.mxu1 }
 0x3ba   :  { %v1774_v30 = vpop.f32.mrf.mxu1 }
 0x3bc   :  { %v1776_v0 = vpop.f32.mrf.mxu1 }
 0x3be   :  { %v1780_v7 = vpop.f32.mrf.mxu1 }
 0x3c0   :  { %v1782_v47 = vpop.f32.mrf.mxu1 }
 0x3c2   :  { %v1784_v34 = vpop.f32.mrf.mxu1 }
 0x3c3   :  { %v1652_v28 = vpop.f32.mrf.mxu0 }
 0x3c4   :  { %v1786_v1 = vpop.f32.mrf.mxu1  ;;  %v1771_v59 = vadd.f32 %v1770_v29, %v1652_v28  ;;  %v2233_v28 = vrot.slane %v2224_v8, %v1013_v27  ;;  %v4136_v8 = vld [vmem:[%s5385_s8 + $0x10] sm:$0xff]  }
 0x3c5   :  { %v1654_v62 = vpop.f32.mrf.mxu0 }
 0x3c6   :  { %v1773_v52 = vadd.f32 %v1772_v45, %v1654_v62 }
 0x3c7   :  { %v1656_v3 = vpop.f32.mrf.mxu0 }
 0x3c8   :  { %v1775_v13 = vadd.f32 %v1774_v30, %v1656_v3 }
 0x3c9   :  { %v1658_v48 = vpop.f32.mrf.mxu0 }
 0x3ca   :  { %v1777_v2 = vadd.f32 %v1776_v0, %v1658_v48 }
 0x3cb   :  { %v1662_v31 = vpop.f32.mrf.mxu0 }
 0x3cc   :  { %v1781_v12 = vadd.f32 %v1780_v7, %v1662_v31 }
 0x3cd   :  { %v1664_v33 = vpop.f32.mrf.mxu0 }
 0x3ce   :  { %v2054_v17 = vpop.f32.mrf.mxu1  ;;  %v1783_v18 = vadd.f32 %v1782_v47, %v1664_v33 }
 0x3cf   :  { %v1666_v15 = vpop.f32.mrf.mxu0 }
 0x3d0   :  { %v2056_v26 = vpop.f32.mrf.mxu1  ;;  %v1785_v19 = vadd.f32 %v1784_v34, %v1666_v15 }
 0x3d1   :  { %v1668_v49 = vpop.f32.mrf.mxu0 }
 0x3d2   :  { %v2058_v55 = vpop.f32.mrf.mxu1  ;;  %v1787_v20 = vadd.f32 %v1786_v1, %v1668_v49 }
 0x3d4   :  { %v2060_v9 = vpop.f32.mrf.mxu1 }
 0x3d6   :  { %v2064_v37 = vpop.f32.mrf.mxu1 }
 0x3d8   :  { %v2066_v41 = vpop.f32.mrf.mxu1 }
 0x3da   :  { %v2068_v60 = vpop.f32.mrf.mxu1 }
 0x3db   :  { %v1907_v16 = vpop.f32.mrf.mxu0 }
 0x3dc   :  { %v1926_v43 = vadd.f32 %v1907_v16, %v1771_v59  ;;  %v2070_v48 = vpop.f32.mrf.mxu1  ;;  %v4138_v59 = vld [vmem:[%s5385_s8 + $0x8] sm:$0xff]  }
 0x3dd   :  { %v1909_v35 = vpop.f32.mrf.mxu0 }
 0x3de   :  { %v1927_v39 = vadd.f32 %v1909_v35, %v1773_v52  ;;  %v2073_v15 = vadd.f32 %v2054_v17, %v1926_v43  ;;  %v4127_v52 = vld [vmem:[%s5385_s8 + $0x84] sm:$0xff]  }
 0x3df   :  { %v1911_v38 = vpop.f32.mrf.mxu0  ;;  %v4144_v43 = vld [vmem:[%s5385_s8 + $0x40] sm:$0xff]  }
 0x3e0   :  { %v1928_v10 = vadd.f32 %v1911_v38, %v1775_v13  ;;  %v2074_v14 = vadd.f32 %v2056_v26, %v1927_v39  ;;  %v4131_v13 = vld [vmem:[%s5385_s8 + $0x74] sm:$0xff]  }
 0x3e1   :  { %v1913_v54 = vpop.f32.mrf.mxu0  ;;  %v4134_v39 = vld [vmem:[%s5385_s8 + $0x18] sm:$0xff]  }
 0x3e2   :  { %v1929_v57 = vadd.f32 %v1913_v54, %v1777_v2  ;;  %v2075_v29 = vadd.f32 %v2058_v55, %v1928_v10  ;;  %v4140_v10 = vld [vmem:[%s5385_s8] sm:$0xff]  }
 0x3e3   :  { %v1917_v32 = vpop.f32.mrf.mxu0 }
 0x3e4   :  { %v1930_v40 = vadd.f32 %v1917_v32, %v1781_v12  ;;  %v2076_v44 = vadd.f32 %v2060_v9, %v1929_v57  ;;  %v4129_v57 = vld [vmem:[%s5385_s8 + $0x7c] sm:$0xff]  }
 0x3e5   :  { %v1919_v53 = vpop.f32.mrf.mxu0 }
 0x3e6   :  { %v1931_v58 = vadd.f32 %v1919_v53, %v1783_v18  ;;  %v2077_v21 = vadd.f32 %v2064_v37, %v1930_v40  ;;  %v4124_v40 = vld [vmem:[%s5384_s7] sm:$0x1f]  }
 0x3e7   :  { %v1921_v56 = vpop.f32.mrf.mxu0 }
 0x3e8   :  { %v1932_v42 = vadd.f32 %v1921_v56, %v1785_v19  ;;  %v2078_v25 = vadd.f32 %v2066_v41, %v1931_v58  ;;  %v4125_v41 = vld [vmem:[%s5384_s7 + $0x8] sm:$0x1f]   ;;  %v4128_v19 = vld [vmem:[%s5385_s8 + $0x30] sm:$0xff]  }
 0x3e9   :  { %v1923_v36 = vpop.f32.mrf.mxu0  ;;  %v4130_v58 = vld [vmem:[%s5385_s8 + $0x28] sm:$0xff]  }
 0x3ea   :  { %v1933_v50 = vadd.f32 %v1923_v36, %v1787_v20  ;;  %v2079_v45 = vadd.f32 %v2068_v60, %v1932_v42  ;;  %v4133_v20 = vld [vmem:[%s5385_s8 + $0x6c] sm:$0xff]   ;;  %v4135_v42 = vld [vmem:[%s5385_s8 + $0x64] sm:$0xff]   ;;  %v4139_v60 = vld [vmem:[%s5385_s8 + $0x54] sm:$0xff]  }
 0x3ec   :  { %v2080_v7 = vadd.f32 %v2070_v48, %v1933_v50  ;;  %v4142_v50 = vld [vmem:[%s5385_s8 + $0x48] ss:$0 sps:$4 sm:$0x77]  }
 0x3f3   :  { %v2197_v4 = vpop.f32.mrf.mxu0 }
 0x3f4   :  { %v2216_v1 = vadd.f32 %v2197_v4, %v2073_v15 }
 0x3f5   :  { %v2199_v11 = vpop.f32.mrf.mxu0 }
 0x3f6   :  { %v2217_v31 = vadd.f32 %v2199_v11, %v2074_v14  ;;  %v2236_v36 = vadd.f32 %v2229_v63, %v2216_v1  ;;  %v4148_v1 = vld [vmem:[%s5386_s9 + $0x18] sm:$0xff]  }
 0x3f7   :  { %v2201_v5 = vpop.f32.mrf.mxu0 }
 0x3f8   :  { %v2218_v47 = vadd.f32 %v2201_v5, %v2075_v29  ;;  %v2237_v54 = vadd.f32 %v2233_v28, %v2217_v31  ;;  %v2244_v2 = vmax.f32 %v2236_v36, 0.0  ;;  %v4126_v5 = vld [vmem:[%s5385_s8 + $0x38] sm:$0xff]   ;;  %v4146_v29 = vld [vmem:[%s5386_s9 + $0x20] sm:$0x3f]  }
 0x3f9   :  { %v2203_v22 = vpop.f32.mrf.mxu0 }
 0x3fa   :  { %v2219_v62 = vadd.f32 %v2203_v22, %v2076_v44  ;;  %v2238_v6 = vadd.f32 %v2229_v63, %v2218_v47  ;;  %v2245_v37 = vmax.f32 %v2237_v54, 0.0  ;;  %v4132_v22 = vld [vmem:[%s5385_s8 + $0x20] sm:$0xff]   ;;  %v4143_v44 = vld [vmem:[%s5385_s8 + $0x94] ss:$0 sps:$4 sm:$0x77]  }
 0x3fb   :  { %v2207_v24 = vpop.f32.mrf.mxu0  ;;  %v4149_v54 = vld [vmem:[%s5386_s9 + $0x40] sm:$0xff]  }
 0x3fc   :  { %v2220_v23 = vadd.f32 %v2207_v24, %v2077_v21  ;;  %v2239_v16 = vadd.f32 %v2233_v28, %v2219_v62  ;;  %v2246_v12 = vmax.f32 %v2238_v6, 0.0  ;;  %v4137_v21 = vld [vmem:[%s5385_s8 + $0x5c] sm:$0xff]   ;;  %v4141_v24 = vld [vmem:[%s5385_s8 + $0x4c] sm:$0xff]  }
 0x3fd   :  { %v2209_v51 = vpop.f32.mrf.mxu0  ;;  %v4153_v6 = vld [vmem:[%s5386_s9 + $0x30] sm:$0xff]  }
 0x3fe   :  { %v2221_v3 = vadd.f32 %v2209_v51, %v2078_v25  ;;  %v2240_v0 = vadd.f32 %v2229_v63, %v2220_v23  ;;  %v2247_v27 = vmax.f32 %v2239_v16, 0.0  ;;  %v2252_v18 = vpack.c.bf16 %v2246_v12, %v2244_v2 }
 0x3ff   :  { %v2211_v30 = vpop.f32.mrf.mxu0  ;;  %v2459_v23 = vsel %vm2457_vm12, %v4142_v50, 0  ;;  %v2580_v25 = vsel %vm2457_vm12, %v4143_v44, 0  ;;  %v4167_v50 = vld [vmem:[%s5386_s9 + $0xb8] sm:$0xff]   ;;  %v4168_v44 = vld [vmem:[%s5386_s9 + $0xb0] sm:$0xff]  }
 0x400   :  { %v2222_v33 = vadd.f32 %v2211_v30, %v2079_v45  ;;  %v2241_v34 = vadd.f32 %v2233_v28, %v2221_v3  ;;  %v2248_v32 = vmax.f32 %v2240_v0, 0.0  ;;  %v2253_v11 = vpack.c.bf16 %v2247_v27, %v2245_v37  ;;  %v4147_v30 = vld [vmem:[%s5386_s9 + $0x48] sm:$0x3f]   ;;  %v4154_v27 = vld [vmem:[%s5386_s9] sm:$0xff]  }
 0x401   :  { %v2213_v49 = vpop.f32.mrf.mxu0 }
 0x402   :  { %v2242_v35 = vadd.f32 %v2229_v63, %v2222_v33  ;;  %v2223_v38 = vadd.f32 %v2213_v49, %v2080_v7  ;;  %v2249_v55 = vmax.f32 %v2241_v34, 0.0  ;;  %v4208_v63 = vmov 0.0  }
 0x404   :  { %v2250_v26 = vmax.f32 %v2242_v35, 0.0  ;;  %v2243_v53 = vadd.f32 %v2233_v28, %v2223_v38 }
 0x406   :  { %v2254_v56 = vpack.c.bf16 %v2250_v26, %v2248_v32  ;;  %v2251_v9 = vmax.f32 %v2243_v53, 0.0  ;;  %v4150_v32 = vld [vmem:[%s5386_s9 + $0x10] sm:$0xff]   ;;  %v4151_v26 = vld [vmem:[%s5386_s9 + $0x38] sm:$0xff]   ;;  %v4152_v53 = vld [vmem:[%s5386_s9 + $0x8] sm:$0xff]  }
 0x408   :  { %v2255_v17 = vpack.c.bf16 %v2251_v9, %v2249_v55  ;;  %v2269_v4 = vsel %vm2267_vm10, %v2254_v56, 0  ;;  %v4155_v55 = vld [vmem:[%s5386_s9 + $0x28] sm:$0xff]  }
 0x40a   :  { %3621 = vmatprep.subr.msk.bf16.mxu1 %vm2267_vm10, %v2255_v17  ;;  %3626 = vmatprep.subr.msk.bf16.mxu0 %vm2267_vm10, %v2255_v17  ;;  %v4156_v17 = vld [vmem:[%s5386_s9 + $0x98] sm:$0x3f]  }
 0x40b   :  { %2287 = vmatpush1.bf16.msra.mxu1 %v2269_v4  ;;  %2341 = vmatpush1.bf16.msra.mxu0 %v2269_v4 }
 0x40c   :  { %2288 = vmatprep.subr.bf16.mxu1 %v2253_v11  ;;  %2342 = vmatprep.subr.bf16.mxu0 %v2253_v11  ;;  %v4157_v11 = vld [vmem:[%s5386_s9 + $0x70] sm:$0x3f]  }
 0x40f   :  { %2289 = vmatpush1.bf16.msra.mxu1 %v2252_v18  ;;  %2343 = vmatpush1.bf16.msra.mxu0 %v2252_v18 }
 0x410   :  { %2461 = vmatprep.subr.bf16.mxu1 %v5402_v46  ;;  %2582 = vmatprep.subr.bf16.mxu0 %v5402_v46 }
 0x412   :  { %3622 = vmatmul.mubr.msk.bf16.vlgmr.msra.gmra.mxu1 %vm2263_vm11, %v4124_v40  ;;  %3627 = vmatmul.mubr.msk.bf16.vlgmr.msra.gmra.mxu0 %vm2263_vm11, %v4125_v41 }
 0x413   :  { %2462 = vmatpush1.bf16.msra.mxu1 %v4126_v5  ;;  %2583 = vmatpush1.bf16.msra.mxu0 %v4127_v52 }
 0x414   :  { %2463 = vmatprep.subr.bf16.mxu1 %v5402_v46  ;;  %2584 = vmatprep.subr.bf16.mxu0 %v5402_v46 }
 0x417   :  { %2464 = vmatpush1.bf16.msra.mxu1 %v4128_v19  ;;  %2585 = vmatpush1.bf16.msra.mxu0 %v4129_v57 }
 0x418   :  { %2465 = vmatprep.subr.bf16.mxu1 %v5402_v46  ;;  %2586 = vmatprep.subr.bf16.mxu0 %v5402_v46 }
 0x41b   :  { %2466 = vmatpush1.bf16.msra.mxu1 %v4130_v58  ;;  %2587 = vmatpush1.bf16.msra.mxu0 %v4131_v13  ;;  %v4158_v58 = vld [vmem:[%s5386_s9 + $0x90] sm:$0xff]   ;;  %v4159_v13 = vld [vmem:[%s5386_s9 + $0x68] sm:$0xff]  }
 0x41c   :  { %2467 = vmatprep.subr.bf16.mxu1 %v5402_v46  ;;  %2588 = vmatprep.subr.bf16.mxu0 %v5402_v46 }
 0x41f   :  { %2468 = vmatpush1.bf16.msra.mxu1 %v4132_v22  ;;  %2589 = vmatpush1.bf16.msra.mxu0 %v4133_v20  ;;  %v4160_v22 = vld [vmem:[%s5386_s9 + $0x88] sm:$0xff]   ;;  %v4161_v20 = vld [vmem:[%s5386_s9 + $0x60] sm:$0xff]  }
 0x420   :  { %2469 = vmatprep.subr.bf16.mxu1 %v5402_v46  ;;  %2590 = vmatprep.subr.bf16.mxu0 %v5402_v46 }
 0x423   :  { %2470 = vmatpush1.bf16.msra.mxu1 %v4134_v39  ;;  %2591 = vmatpush1.bf16.msra.mxu0 %v4135_v42  ;;  %v4162_v39 = vld [vmem:[%s5386_s9 + $0x80] sm:$0xff]   ;;  %v4163_v42 = vld [vmem:[%s5386_s9 + $0x58] sm:$0xff]  }
 0x424   :  { %2471 = vmatprep.subr.bf16.mxu1 %v5402_v46  ;;  %2592 = vmatprep.subr.bf16.mxu0 %v5402_v46 }
 0x427   :  { %2472 = vmatpush1.bf16.msra.mxu1 %v4136_v8  ;;  %2593 = vmatpush1.bf16.msra.mxu0 %v4137_v21  ;;  %v4164_v8 = vld [vmem:[%s5386_s9 + $0x78] sm:$0xff]   ;;  %v4165_v21 = vld [vmem:[%s5386_s9 + $0x50] sm:$0xff]  }
 0x428   :  { %2473 = vmatprep.subr.bf16.mxu1 %v5402_v46  ;;  %2594 = vmatprep.subr.bf16.mxu0 %v5402_v46 }
 0x42b   :  { %2474 = vmatpush1.bf16.msra.mxu1 %v4138_v59  ;;  %2595 = vmatpush1.bf16.msra.mxu0 %v4139_v60  ;;  %v4166_v59 = vld [vmem:[%s5386_s9 + $0xc0] sm:$0x3f]  }
 0x42c   :  { %2475 = vmatprep.subr.bf16.mxu1 %v5402_v46  ;;  %2596 = vmatprep.subr.bf16.mxu0 %v5402_v46 }
 0x42f   :  { %2476 = vmatpush1.bf16.msra.mxu1 %v4140_v10  ;;  %2597 = vmatpush1.bf16.msra.mxu0 %v4141_v24 }
 0x430   :  { %2489 = vmatprep.subr.bf16.mxu1 %v5402_v46  ;;  %2610 = vmatprep.subr.bf16.mxu0 %v5402_v46 }
 0x433   :  { %2490 = vmatpush2.bf16.msra.mxu1 %v2459_v23  ;;  %2611 = vmatpush2.bf16.msra.mxu0 %v2580_v25  ;;  %v4169_v23 = vld [vmem:[%s5386_s9 + $0xa8] sm:$0xff]   ;;  %v4170_v25 = vld [vmem:[%s5386_s9 + $0xa0] sm:$0xff]  }
 0x434   :  { %2491 = vmatprep.subr.bf16.mxu1 %v5402_v46  ;;  %2612 = vmatprep.subr.bf16.mxu0 %v5402_v46  ;;  %v4209_v46 = vmov 65535  }
 0x435   :  { %v2682_v45 = vsel %vm2267_vm10, 4294967295, %v4209_v46  ;;  %v4175_v46 = vld [vmem:[%s5388_s11 + $0x18] sm:$0xff]  }
 0x436   :  { %v5188_v31 = vsel %vm836_vm2, %v2682_v45, 0  ;;  %v4176_v45 = vld [vmem:[%s5388_s11 + $0x10] sm:$0xff]  }
 0x437   :  { %2492 = vmatpush2.bf16.msra.mxu1 %v4144_v43  ;;  %2613 = vmatpush2.bf16.msra.mxu0 %v4145_v61  ;;  %v2760_v34 = vand.u32 %v4146_v29, %v5188_v31  ;;  %v2685_v35 = vand.u32 %v4147_v30, %v5188_v31  ;;  %v2935_v40 = vand.u32 %v4156_v17, %v5188_v31  ;;  %v4171_v61 = vld [vmem:[%s5388_s11 + $0x38] ss:$0 sps:$4 sm:$0xff]   ;;  %v4179_v29 = vld [vmem:[%s5390_s13 + $0x28] ss:$0 sps:$4 sm:$0x33]  }
 0x438   :  { %3818 = vmatprep.subr.bf16.mxu0 %v4208_v63  ;;  %3804 = vmatprep.subr.bf16.mxu1 %v4208_v63  ;;  %v2847_v19 = vand.u32 %v4157_v11, %v5188_v31  ;;  %v3023_v10 = vand.u32 %v4166_v59, %v5188_v31  ;;  %v3247_v30 = vsel %vm1611_vm7, %v4179_v29, 0  ;;  %v4180_v31 = vld [vmem:[%s5390_s13 + $0x20] sm:$0xff]  }
 0x439   :  { %v3739_v17 = vld [vmem:[%s5387_s10] ss:$0 sm:$0xff] }
 0x4d2   :  { %v2308_v51 = vpop.f32.mrf.mxu1  ;;  %v2362_v14 = vpop.f32.mrf.mxu0 }
 0x4d3   :  { %v2371_v49 = vmax.f32 %v2308_v51, %v2362_v14  ;;  %v3148_v51 = vsel %vm1315_vm6, %v4171_v61, 0  ;;  %v4172_v14 = vld [vmem:[%s5388_s11 + $0x30] sm:$0xff]  }
 0x4d4   :  { %v2310_v62 = vpop.f32.mrf.mxu1  ;;  %v2364_v3 = vpop.f32.mrf.mxu0 }
 0x4d5   :  { %v2372_v15 = vmax.f32 %v2310_v62, %v2364_v3  ;;  %v4173_v62 = vld [vmem:[%s5388_s11 + $0x28] sm:$0xff]   ;;  %v4174_v3 = vld [vmem:[%s5388_s11 + $0x20] sm:$0xff]  }
 0x4d6   :  { %v2312_v48 = vpop.f32.mrf.mxu1  ;;  %v2366_v28 = vpop.f32.mrf.mxu0 }
 0x4d7   :  { %v2373_v0 = vmax.f32 %v2312_v48, %v2366_v28  ;;  %v4177_v48 = vld [vmem:[%s5388_s11 + $0x8] sm:$0xff]   ;;  %v4178_v28 = vld [vmem:[%s5388_s11] sm:$0xff]  }
 0x4d8   :  { %v2314_v33 = vpop.f32.mrf.mxu1  ;;  %v2368_v7 = vpop.f32.mrf.mxu0 }
 0x4d9   :  { %v2374_v47 = vmax.f32 %v2314_v33, %v2368_v7  ;;  %v2375_v38 = vpack.c.bf16 %v2373_v0, %v2371_v49  ;;  %v4181_v0 = vld [vmem:[%s5390_s13 + $0x18] sm:$0xff]   ;;  %v4182_v33 = vld [vmem:[%s5390_s13 + $0x10] sm:$0xff]  }
 0x4db   :  { %v2376_v16 = vpack.c.bf16 %v2374_v47, %v2372_v15 }
 0x4dd   :  { %3638 = vmatprep.mubr.msk.bf16.mxu1 %vm2453_vm13, %v2376_v16  ;;  %3668 = vmatprep.mubr.msk.bf16.mxu0 %vm2453_vm13, %v2376_v16 }
 0x4de   :  { %2494 = vmatmul.mubr.bf16.vlgmr.msra.gmra.mxu1 %v2375_v38  ;;  %2615 = vmatmul.mubr.bf16.vlgmr.msra.gmra.mxu0 %v2375_v38 }
 0x4df   :  { %3819 = vmatpush3.bf16.msra.mxu0 %v2760_v34  ;;  %3805 = vmatpush3.bf16.msra.mxu1 %v2685_v35 }
 0x4e0   :  { %3820 = vmatprep.subr.bf16.mxu0 %v4208_v63  ;;  %3806 = vmatprep.subr.bf16.mxu1 %v4208_v63 }
 0x4e1   :  { %3828 = vmatprep.mubr.msk.bf16.mxu0 %vm4210_vm14, %v4208_v63  ;;  %3814 = vmatprep.mubr.msk.bf16.mxu1 %vm4210_vm14, %v4208_v63 }
 0x4e3   :  { %3821 = vmatpush3.bf16.msra.mxu0 %v4148_v1  ;;  %3807 = vmatpush3.bf16.msra.mxu1 %v4149_v54 }
 0x4e4   :  { %3822 = vmatprep.subr.bf16.mxu0 %v4208_v63  ;;  %3808 = vmatprep.subr.bf16.mxu1 %v4208_v63 }
 0x4e7   :  { %3823 = vmatpush3.bf16.msra.mxu0 %v4150_v32  ;;  %3809 = vmatpush3.bf16.msra.mxu1 %v4151_v26 }
 0x4e8   :  { %3824 = vmatprep.subr.bf16.mxu0 %v4208_v63  ;;  %3810 = vmatprep.subr.bf16.mxu1 %v4208_v63 }
 0x4eb   :  { %3825 = vmatpush3.bf16.msra.mxu0 %v4152_v53  ;;  %3811 = vmatpush3.bf16.msra.mxu1 %v4153_v6 }
 0x4ec   :  { %3826 = vmatprep.subr.bf16.mxu0 %v4208_v63  ;;  %3812 = vmatprep.subr.bf16.mxu1 %v4208_v63 }
 0x4ef   :  { %3827 = vmatpush3.bf16.msra.mxu0 %v4154_v27  ;;  %3813 = vmatpush3.bf16.msra.mxu1 %v4155_v55 }
 0x4f0   :  { %3846 = vmatprep.subr.bf16.mxu0 %v4208_v63  ;;  %3832 = vmatprep.subr.bf16.mxu1 %v4208_v63 }
 0x59e   :  { %v2495_v56 = vpop.f32.mrf.mxu1  ;;  %v2616_v9 = vpop.f32.mrf.mxu0 }
 0x59f   :  { %v2623_v2 = vmax.f32 %v2495_v56, %v2616_v9 }
 0x5a0   :  { %v2497_v36 = vpop.f32.mrf.mxu1  ;;  %v2618_v37 = vpop.f32.mrf.mxu0 }
 0x5a2   :  { %v2498_v12 = vpop.f32.mrf.mxu1  ;;  %v2619_v4 = vpop.f32.mrf.mxu0 }
 0x5a3   :  { %v2624_v18 = vmax.f32 %v2498_v12, %v2619_v4 }
 0x5a4   :  { %v2500_v41 = vpop.f32.mrf.mxu1  ;;  %v2621_v5 = vpop.f32.mrf.mxu0 }
 0x5a5   :  { %v2625_v52 = vpack.c.bf16 %v2624_v18, %v2623_v2  ;;  %v4183_v5 = vld [vmem:[%s5390_s13 + $0x8] sm:$0xff]  }
 0x5a7   :  { %3829 = vmatmul.mubr.msk.bf16.vlgmr.msra.gmra.mxu0 %vm2678_vm15, %v2625_v52  ;;  %v2648_v57 = vrot.slane %v2625_v52, 1  ;;  %v2901_v60 = vrot.slane %v2625_v52, 3  ;;  %v2813_v24 = vrot.slane %v2625_v52, 2  ;;  %v2989_v43 = vrot.slane %v2625_v52, 4  ;;  %v4184_v52 = vld [vmem:[%s5390_s13] sm:$0xff]   ;;  %s3296_s13 = sshll.u32 %s4211_s30, 4  ;;  %s3297_s13 = int_to_ptr.vmem [resolvable:$true] %s3296_s13 }
 0x5a8   :  { %3847 = vmatpush3.bf16.msra.mxu0 %v2935_v40  ;;  %3856 = vmatprep.mubr.msk.bf16.mxu0 %vm4210_vm14, %v4208_v63  ;;  %p4190_p1 = scmp.lt.s32.totalorder %s3297_s13, %s3297_s13 }
 0x5a9   :  { %3815 = vmatmul.mubr.msk.bf16.vlgmr.msra.gmra.mxu1 %vm2678_vm15, %v2648_v57  ;;  %3848 = vmatprep.subr.bf16.mxu0 %v4208_v63 }
 0x5aa   :  { %3833 = vmatpush3.bf16.msra.mxu1 %v2847_v19  ;;  %3842 = vmatprep.mubr.msk.bf16.mxu1 %vm4210_vm14, %v4208_v63  ;;  %v3740_v19 = vld [vmem:[%s5389_s12] ss:$0 sm:$0xff]  ;;  %s4185_s12 = scalar_lea.vmem %s3297_s13, 32 }
 0x5ab   :  { %3834 = vmatprep.subr.bf16.mxu1 %v4208_v63  ;;  %p4186_p0 = scmp.ne.s32.totalorder %s3297_s13, %s4185_s12  ;;  %p4191_p2 = scmp.lt.s32.totalorder %s4185_s12, %s4185_s12 }
 0x5ac   :  { %3849 = vmatpush3.bf16.msra.mxu0 %v4158_v58 }
 0x5ad   :  { %3850 = vmatprep.subr.bf16.mxu0 %v4208_v63  ;;  %p4192_p3 = por %p4191_p2, %p4190_p1 }
 0x5ae   :  { %3835 = vmatpush3.bf16.msra.mxu1 %v4159_v13 }
 0x5af   :  { %3836 = vmatprep.subr.bf16.mxu1 %v4208_v63  ;;  %p4193_p4 = pnand %p4192_p3, %p4186_p0 }
 0x5b0   :  { %3851 = vmatpush3.bf16.msra.mxu0 %v4160_v22 }
 0x5b1   :  { %3852 = vmatprep.subr.bf16.mxu0 %v4208_v63 }
 0x5b2   :  { %3837 = vmatpush3.bf16.msra.mxu1 %v4161_v20 }
 0x5b3   :  { %3838 = vmatprep.subr.bf16.mxu1 %v4208_v63 }
 0x5b4   :  { %3853 = vmatpush3.bf16.msra.mxu0 %v4162_v39 }
 0x5b5   :  { %3854 = vmatprep.subr.bf16.mxu0 %v4208_v63 }
 0x5b6   :  { %3839 = vmatpush3.bf16.msra.mxu1 %v4163_v42 }
 0x5b7   :  { %3840 = vmatprep.subr.bf16.mxu1 %v4208_v63 }
 0x5b8   :  { %3855 = vmatpush3.bf16.msra.mxu0 %v4164_v8 }
 0x5b9   :  { %3874 = vmatprep.subr.bf16.mxu0 %v4208_v63 }
 0x5ba   :  { %3841 = vmatpush3.bf16.msra.mxu1 %v4165_v21 }
 0x5bb   :  { %3857 = vmatmul.mubr.msk.bf16.vlgmr.msra.gmra.mxu0 %vm2678_vm15, %v2901_v60  ;;  %3860 = vmatprep.subr.bf16.mxu1 %v4208_v63 }
 0x5bc   :  { %3890 = vmatprep.mubr.msk.bf16.mxu0 %vm4210_vm14, %v4208_v63  ;;  %3875 = vmatpush3.bf16.msra.mxu0 %v3148_v51 }
 0x5bd   :  { %3843 = vmatmul.mubr.msk.bf16.vlgmr.msra.gmra.mxu1 %vm2678_vm15, %v2813_v24  ;;  %3876 = vmatprep.subr.bf16.mxu0 %v4208_v63 }
 0x5be   :  { %3861 = vmatpush3.bf16.msra.mxu1 %v3023_v10  ;;  %3870 = vmatprep.mubr.msk.bf16.mxu1 %vm4210_vm14, %v4208_v63 }
 0x5bf   :  { %3862 = vmatprep.subr.bf16.mxu1 %v4208_v63 }
 0x5c0   :  { %3877 = vmatpush3.bf16.msra.mxu0 %v4172_v14 }
 0x5c1   :  { %3878 = vmatprep.subr.bf16.mxu0 %v4208_v63 }
 0x5c2   :  { %3863 = vmatpush3.bf16.msra.mxu1 %v4167_v50 }
 0x5c3   :  { %3864 = vmatprep.subr.bf16.mxu1 %v4208_v63 }
 0x5c4   :  { %3879 = vmatpush3.bf16.msra.mxu0 %v4173_v62 }
 0x5c5   :  { %3880 = vmatprep.subr.bf16.mxu0 %v4208_v63 }
 0x5c6   :  { %3865 = vmatpush3.bf16.msra.mxu1 %v4168_v44 }
 0x5c7   :  { %3866 = vmatprep.subr.bf16.mxu1 %v4208_v63 }
 0x5c8   :  { %3881 = vmatpush3.bf16.msra.mxu0 %v4174_v3 }
 0x5c9   :  { %3882 = vmatprep.subr.bf16.mxu0 %v4208_v63 }
 0x5ca   :  { %3867 = vmatpush3.bf16.msra.mxu1 %v4169_v23 }
 0x5cb   :  { %3868 = vmatprep.subr.bf16.mxu1 %v4208_v63 }
 0x5cc   :  { %3883 = vmatpush3.bf16.msra.mxu0 %v4175_v46 }
 0x5cd   :  { %3884 = vmatprep.subr.bf16.mxu0 %v4208_v63 }
 0x5ce   :  { %3869 = vmatpush3.bf16.msra.mxu1 %v4170_v25 }
 0x5cf   :  { %3894 = vmatprep.subr.bf16.mxu1 %v4208_v63 }
 0x5d0   :  { %3885 = vmatpush3.bf16.msra.mxu0 %v4176_v45 }
 0x5d1   :  { %3871 = vmatmul.mubr.msk.bf16.vlgmr.msra.gmra.mxu1 %vm2678_vm15, %v2989_v43  ;;  %3886 = vmatprep.subr.bf16.mxu0 %v4208_v63 }
 0x5d2   :  { %3906 = vmatprep.mubr.msk.bf16.mxu1 %vm4210_vm14, %v4208_v63  ;;  %3895 = vmatpush3.bf16.msra.mxu1 %v3247_v30 }
 0x5d3   :  { %3896 = vmatprep.subr.bf16.mxu1 %v4208_v63 }
 0x5d4   :  { %3887 = vmatpush3.bf16.msra.mxu0 %v4177_v48 }
 0x5d5   :  { %3888 = vmatprep.subr.bf16.mxu0 %v4208_v63 }
 0x5d6   :  { %3897 = vmatpush3.bf16.msra.mxu1 %v4180_v31 }
 0x5d7   :  { %3898 = vmatprep.subr.bf16.mxu1 %v4208_v63 }
 0x5d8   :  { %3889 = vmatpush3.bf16.msra.mxu0 %v4178_v28 }
 0x5da   :  { %3899 = vmatpush3.bf16.msra.mxu1 %v4181_v0 }
 0x5db   :  { %3900 = vmatprep.subr.bf16.mxu1 %v4208_v63 }
 0x5de   :  { %3901 = vmatpush3.bf16.msra.mxu1 %v4182_v33 }
 0x5df   :  { %3902 = vmatprep.subr.bf16.mxu1 %v4208_v63 }
 0x5e2   :  { %3903 = vmatpush3.bf16.msra.mxu1 %v4183_v5 }
 0x5e3   :  { %3904 = vmatprep.subr.bf16.mxu1 %v4208_v63  ;;  %v3750_v63 = vld [vmem:[%s5391_s14] ss:$0 sm:$0xff] }
 0x5e6   :  { %3905 = vmatpush3.bf16.msra.mxu1 %v4184_v52 }
 0x667   :  { %v2796_v7 = vpop.f32.mrf.mxu0 }
 0x669   :  { %v2721_v15 = vpop.f32.mrf.mxu1  ;;  %v3830_v47 = vpop.f32.mrf.mxu0 }
 0x66a   :  { %v2797_v56 = vadd.f32 %v2796_v7, %v2721_v15 }
 0x66b   :  { %v3816_v49 = vpop.f32.mrf.mxu1  ;;  %v2799_v16 = vpop.f32.mrf.mxu0 }
 0x66d   :  { %v2724_v34 = vpop.f32.mrf.mxu1  ;;  %v3831_v35 = vpop.f32.mrf.mxu0 }
 0x66f   :  { %v3817_v38 = vpop.f32.mrf.mxu1 }
 0x67b   :  { %v2971_v1 = vpop.f32.mrf.mxu0 }
 0x67d   :  { %v2883_v54 = vpop.f32.mrf.mxu1  ;;  %v3858_v32 = vpop.f32.mrf.mxu0 }
 0x67e   :  { %v2889_v9 = vadd.f32 %v2883_v54, %v2797_v56 }
 0x67f   :  { %v3844_v26 = vpop.f32.mrf.mxu1  ;;  %v2974_v53 = vpop.f32.mrf.mxu0 }
 0x680   :  { %v2977_v36 = vadd.f32 %v2971_v1, %v2889_v9 }
 0x681   :  { %v2886_v6 = vpop.f32.mrf.mxu1  ;;  %v3859_v27 = vpop.f32.mrf.mxu0 }
 0x683   :  { %v3845_v55 = vpop.f32.mrf.mxu1 }
 0x691   :  { %v3059_v37 = vpop.f32.mrf.mxu1 }
 0x692   :  { %v3065_v12 = vadd.f32 %v3059_v37, %v2977_v36 }
 0x693   :  { %v3872_v4 = vpop.f32.mrf.mxu1 }
 0x694   :  { %v3073_v11 = vadd.f32 %v3739_v17, %v3065_v12 }
 0x695   :  { %v3062_v2 = vpop.f32.mrf.mxu1 }
 0x696   :  { %v3074_v18 = vmax.f32 %v3073_v11, 0.0 }
 0x697   :  { %v3873_v40 = vpop.f32.mrf.mxu1 }
 0x698   :  { %v3075_v41 = vpack.c.bf16 %v3074_v18, %v3074_v18 }
 0x69a   :  { %3891 = vmatmul.mubr.msk.bf16.vlgmr.msra.gmra.mxu0 %vm3143_vm0, %v3075_v41 }
 0x75a   :  { %v3184_v57 = vpop.f32.mrf.mxu0 }
 0x75b   :  { %v3185_v58 = vadd.f32 %v3740_v19, %v3184_v57 }
 0x75c   :  { %v3892_v13 = vpop.f32.mrf.mxu0 }
 0x75d   :  { %v3190_v22 = vmax.f32 %v3185_v58, 0.0 }
 0x75e   :  { %v3187_v20 = vpop.f32.mrf.mxu0 }
 0x75f   :  { %v3191_v39 = vpack.c.bf16 %v3190_v22, %v3190_v22 }
 0x760   :  { %v3893_v42 = vpop.f32.mrf.mxu0 }
 0x761   :  { %3907 = vmatmul.mubr.msk.bf16.vlgmr.msra.gmra.mxu1 %vm1604_vm9, %v3191_v39 }
 0x821   :  { %v3283_v8 = vpop.f32.mrf.mxu1 }
 0x822   :  { %v3284_v21 = vadd.f32 %v3750_v63, %v3283_v8 }
 0x823   :  { %v3908_v59 = vpop.f32.mrf.mxu1 }
 0x824   :  { %3289 = vst [vmem:[#allocation2] sm:$0x3] %v3284_v21 }
 0x825   :  { %v3286_v60 = vpop.f32.mrf.mxu1 }
 0x826   :  { %4196 = shalt.err (!%p4193_p4)
}
 0x827   :  { %3299 = dma.vmem_to_hbm [thread:$0]  %s3297_s13, 32, %s5392_s15, [#allocation3]   ;;  %v3909_v10 = vpop.f32.mrf.mxu1 }
 0x828   :  { %4205 = dma.done.wait [#allocation3], 32  }
 0x829   :  { %4206 = vsyncadd [#allocation3], 4294967264 }
 0x82a   :  { %3303 = vsyncpa [#allocation3], 1 }

</bundles_post_ra>
